<compile_context>
chip_gen: v5e
topology: v5e:2x2
jax: 0.10.0
libtpu: 0.0.40
codegen_flags: <defaults>
</compile_context>

<pallas_src>
import functools
import math

import jax
import jax.numpy as jnp
from jax.experimental import pallas as pl
from jax.experimental.pallas import tpu as pltpu

LN_EPS = 1e-5
_GELU_C = 0.7978845608028654  # sqrt(2/pi)


def _round_up(x, m):
    return (x + m - 1) // m * m


def _gelu_new(x):  # GPT-2 "gelu_new" (tanh approximation)
    return 0.5 * x * (1.0 + jnp.tanh(_GELU_C * (x + 0.044715 * x * x * x)))


def _layer_norm(x, w, b):  # used by the pure-JAX reference
    mu = jnp.mean(x, axis=-1, keepdims=True)
    var = jnp.mean(jnp.square(x - mu), axis=-1, keepdims=True)
    return (x - mu) * jax.lax.rsqrt(var + LN_EPS) * w + b


# --------------------------------- fused kernel --------------------------------
def fused_kernel(zs_ref, w_in_ref, wpe_ref, vec_ref, w_att_ref, w_prj_ref,
                 w_fc_ref, w_fp_ref, ro_ref, out_ref, h_ref,
                 *, n_head, n_embd, bt):
    layer = pl.program_id(1)
    n_layer = pl.num_programs(1)
    M, E_pad = h_ref.shape                 # M = bt * t_pad
    H, E = n_head, n_embd
    hd = E // H
    t_pad = M // bt
    qkv_cols = w_att_ref.shape[-1]
    inv_e = 1.0 / E

    if E_pad > E:
        ecol = jax.lax.broadcasted_iota(jnp.int32, (1, E_pad), 1)
        e_mask = (ecol < E).astype(jnp.float32)
    else:
        e_mask = None

    def masked_ln(x, w, b):
        # Padded embedding lanes of x are exactly zero by construction, so the
        # unmasked sum already gives the correct mean over the E real lanes.
        mu = jnp.sum(x, axis=-1, keepdims=True) * inv_e
        xc = x - mu
        if e_mask is not None:
            xc = xc * e_mask               # keep padded lanes out of the variance
        var = jnp.sum(xc * xc, axis=-1, keepdims=True) * inv_e
        return xc * jax.lax.rsqrt(var + LN_EPS) * w + b

    # ---- embedding (read_in linear + wpe, b_in folded into wpe), per batch block ----
    @pl.when(layer == 0)
    def _():
        h_ref[...] = jnp.dot(zs_ref[...], w_in_ref[...],
                             preferred_element_type=jnp.float32) + wpe_ref[...]

    h = h_ref[...]                                          # (M, E_pad) f32
    vecs = vec_ref[...]                                     # (8, F_pad) f32
    ln1w, ln1b = vecs[0:1, :E_pad], vecs[1:2, :E_pad]
    b_qkv = vecs[2:3, :qkv_cols]
    b_prj = vecs[3:4, :E_pad]
    ln2w, ln2b = vecs[4:5, :E_pad], vecs[5:6, :E_pad]
    b_fc = vecs[6:7, :]
    b_fp = vecs[7:8, :E_pad]

    # ---- causal multi-head self-attention ----
    x = masked_ln(h, ln1w, ln1b).astype(jnp.bfloat16)
    qkv = jnp.dot(x, w_att_ref[...],
                  preferred_element_type=jnp.float32) + b_qkv   # (M, qkv_cols)

    qrow = jax.lax.broadcasted_iota(jnp.int32, (t_pad, t_pad), 0)
    kcol = jax.lax.broadcasted_iota(jnp.int32, (t_pad, t_pad), 1)
    causal = qrow >= kcol

    # Static unroll over (bt, H): both are small (bt <= 8, typical H <= 16).
    # TODO(synk): move to lax.fori_loop with a VMEM accumulator if bt*H grows large
    # enough to hurt vreg live ranges / compile time.
    samples = []
    for i in range(bt):
        qkv_i = qkv[i * t_pad:(i + 1) * t_pad, :]
        heads = []
        for hh in range(H):
            # 1/sqrt(hd) is already folded into the q columns of w_qkv / b_qkv.
            q = qkv_i[:, hh * hd:(hh + 1) * hd].astype(jnp.bfloat16)
            k = qkv_i[:, E + hh * hd:E + (hh + 1) * hd].astype(jnp.bfloat16)
            v = qkv_i[:, 2 * E + hh * hd:2 * E + (hh + 1) * hd].astype(jnp.bfloat16)
            s = jax.lax.dot_general(q, k, (((1,), (1,)), ((), ())),
                                    preferred_element_type=jnp.float32)  # (t_pad, t_pad)
            s = jnp.where(causal, s, -1e30)
            s = s - jnp.max(s, axis=-1, keepdims=True)
            p = jnp.exp(s)
            denom = jnp.sum(p, axis=-1, keepdims=True)
            o = jnp.dot(p.astype(jnp.bfloat16), v, preferred_element_type=jnp.float32)
            o = o * pl.reciprocal(denom, approx=True)
            heads.append(o.astype(jnp.bfloat16))
        samples.append(jnp.concatenate(heads, axis=1))       # (t_pad, E)
    attn = jnp.concatenate(samples, axis=0)                  # (M, E) bf16
    h = h + jnp.dot(attn, w_prj_ref[...],
                    preferred_element_type=jnp.float32) + b_prj

    # ---- MLP ----
    x = masked_ln(h, ln2w, ln2b).astype(jnp.bfloat16)
    f = jnp.dot(x, w_fc_ref[...], preferred_element_type=jnp.float32) + b_fc
    f = _gelu_new(f)
    h = h + jnp.dot(f.astype(jnp.bfloat16), w_fp_ref[...],
                    preferred_element_type=jnp.float32) + b_fp
    h_ref[...] = h

    # ---- final layernorm + read_out, one lane-dense (1, M) row per batch block ----
    @pl.when(layer == n_layer - 1)
    def _():
        ro = ro_ref[...]
        xf = masked_ln(h, ro[0:1, :], ro[1:2, :])
        out_ref[...] = jax.lax.dot_general(ro[2:3, :], xf, (((1,), (1,)), ((), ())),
                                           preferred_element_type=jnp.float32)


# ----------------------------------- wrapper ------------------------------------
def transformer_forward(xs, ys, params, n_head, inds=None):
    B, P, D = xs.shape
    E = params["w_in"].shape[1]
    layers = params["layers"]
    L = len(layers)
    assert E % n_head == 0
    hd = E // n_head
    T = 2 * P
    F = 4 * E

    # Lane (last) dims pad to 128; T is a sublane/M dim -> only 16 (bf16 packing).
    T_pad = _round_up(T, 16)
    E_pad = _round_up(E, 128)
    D_pad = _round_up(D, 128)
    F_pad = _round_up(F, 128)
    QKV_pad = _round_up(3 * E, 128)

    # Batch-block: Bt samples per grid step so per-layer weights are streamed B/Bt
    # (not B) times and GEMM M = Bt*T_pad fills the 256-wide MXU on v6e/v7x.
    # Largest divisor of B with M <= 512 and Bt <= 8 (bounds unroll / VMEM).
    # TODO(synk): on v7x prefer B//Bt even so both TensorCores stay busy.
    Bt = 1
    for c in range(1, min(B, 8) + 1):
        if B % c == 0 and c * T_pad <= 512:
            Bt = c
    Bg = B // Bt
    M = Bt * T_pad

    # ---- _combine: interleave x rows and (y, 0, ..., 0) rows (plain-JAX glue) ----
    ys_wide = jnp.concatenate(
        [ys[..., None], jnp.zeros((B, P, D - 1), xs.dtype)], axis=2)
    zs = jnp.stack([xs, ys_wide], axis=2).reshape(B, T, D)
    zs = jnp.pad(zs, ((0, 0), (0, T_pad - T), (0, D_pad - D)))
    zs_b = zs.reshape(B * T_pad, D_pad).astype(jnp.bfloat16)   # bf16 on the wire

    # ---- weight repacking / lane padding (plain-JAX glue) ----
    def pad2(w, r, c):
        return jnp.pad(w, ((0, r - w.shape[0]), (0, c - w.shape[1])))

    scale = 1.0 / math.sqrt(hd)

    w_in = pad2(params["w_in"], D_pad, E_pad).astype(jnp.bfloat16)
    wpe_eff = pad2(params["wpe"][:T], T_pad, E_pad) + pad2(params["b_in"], 1, E_pad)
    wpe_t = jnp.tile(wpe_eff, (Bt, 1)).astype(jnp.float32)     # (M, E_pad)
    ro = jnp.concatenate([pad2(params["lnf_w"], 1, E_pad),
                          pad2(params["lnf_b"], 1, E_pad),
                          pad2(params["w_out"].T, 1, E_pad)], axis=0).astype(jnp.float32)

    def pack_qkv_w(w):   # (E,3E) -> (E_pad, QKV_pad), 1/sqrt(hd) folded into q cols
        w = jnp.concatenate([w[:, :E] * scale, w[:, E:]], axis=1)
        return pad2(w, E_pad, QKV_pad)

    def pack_qkv_b(b):   # (1,3E) -> (1, F_pad)
        b = jnp.concatenate([b[:, :E] * scale, b[:, E:]], axis=1)
        return pad2(b, 1, F_pad)

    def pack_vecs(lp):   # 8 small per-layer rows -> one (8, F_pad) slab (1 DMA/step)
        rows = [pad2(lp["ln1_w"], 1, F_pad), pad2(lp["ln1_b"], 1, F_pad),
                pack_qkv_b(lp["b_qkv"]), pad2(lp["b_proj"], 1, F_pad),
                pad2(lp["ln2_w"], 1, F_pad), pad2(lp["ln2_b"], 1, F_pad),
                pad2(lp["b_fc"], 1, F_pad), pad2(lp["b_fcproj"], 1, F_pad)]
        return jnp.concatenate(rows, axis=0)

    vecs = jnp.stack([pack_vecs(lp) for lp in layers]).astype(jnp.float32)
    w_att = jnp.stack([pack_qkv_w(lp["w_qkv"]) for lp in layers]).astype(jnp.bfloat16)
    w_prj = jnp.stack([pad2(lp["w_proj"], E, E_pad) for lp in layers]).astype(jnp.bfloat16)
    w_fc = jnp.stack([pad2(lp["w_fc"], E_pad, F_pad) for lp in layers]).astype(jnp.bfloat16)
    w_fp = jnp.stack([pad2(lp["w_fcproj"], F_pad, E_pad) for lp in layers]).astype(jnp.bfloat16)

    # ---- specs ----
    def const_spec(a):
        return pl.BlockSpec(a.shape, lambda b, l, nd=a.ndim: (0,) * nd)

    def layer_spec(a):
        return pl.BlockSpec((None,) + a.shape[1:], lambda b, l: (l, 0, 0))

    in_specs = [
        pl.BlockSpec((M, D_pad), lambda b, l: (b, 0)),          # zs
        const_spec(w_in), const_spec(wpe_t),
        layer_spec(vecs), layer_spec(w_att), layer_spec(w_prj),
        layer_spec(w_fc), layer_spec(w_fp),
        const_spec(ro),
    ]
    out_spec = pl.BlockSpec((None, 1, M), lambda b, l: (b, 0, 0))

    # ---- VMEM budget: double-buffered per-layer slabs + constants + scratch ----
    per_layer_bytes = (2 * (E_pad * QKV_pad + E * E_pad + 2 * E_pad * F_pad)   # bf16
                       + 8 * F_pad * 4)                                        # vecs
    const_bytes = D_pad * E_pad * 2 + M * E_pad * 4 + 3 * E_pad * 4
    io_bytes = M * D_pad * 2 + M * 4
    act_bytes = M * (QKV_pad + F_pad + 4 * E_pad) * 4        # headroom for temporaries
    demand = (2 * per_layer_bytes + 2 * io_bytes + const_bytes
              + M * E_pad * 4 + act_bytes)
    try:
        cap = int(pltpu.get_tpu_info().vmem_capacity_bytes * 0.85)
    except Exception:
        cap = 64 << 20          # v7x physical VMEM; safe on every generation
    vmem_limit = int(max(32 << 20, min(demand * 5 // 4 + (4 << 20), cap)))
    # TODO(synk): if demand ever exceeds the v7x cap, stream w_fc/w_fp in F chunks
    # via an extra reduction grid axis instead of shrinking Bt.

    # ---- advisory cost estimate (weights are streamed Bg*L times) ----
    flops_layer = (2 * M * (E_pad * QKV_pad + E * E_pad + 2 * E_pad * F_pad)
                   + Bt * n_head * 4 * T_pad * T_pad * hd)
    flops = Bg * (L * flops_layer + 2 * M * D_pad * E_pad + 2 * M * E_pad)
    transcend = Bg * L * (Bt * n_head * T_pad * T_pad + M * F_pad)
    bytes_accessed = Bg * (L * per_layer_bytes + const_bytes) + B * T_pad * (D_pad * 2 + 4)
    cost = pl.CostEstimate(flops=int(flops), transcendentals=int(transcend),
                           bytes_accessed=int(bytes_accessed))

    kern = functools.partial(fused_kernel, n_head=n_head, n_embd=E, bt=Bt)
    out = pl.pallas_call(
        kern,
        out_shape=jax.ShapeDtypeStruct((Bg, 1, M), jnp.float32),
        grid_spec=pltpu.PrefetchScalarGridSpec(
            num_scalar_prefetch=0,
            grid=(Bg, L),
            in_specs=in_specs,
            out_specs=out_spec,
            scratch_shapes=[pltpu.VMEM((M, E_pad), jnp.float32)]),
        compiler_params=pltpu.CompilerParams(
            dimension_semantics=("parallel", "arbitrary"),
            vmem_limit_bytes=vmem_limit),
        cost_estimate=cost,
    )(zs_b, w_in, wpe_t, vecs, w_att, w_prj, w_fc, w_fp, ro)

    pred = out.reshape(B, T_pad)[:, :T:2] + params["b_out"][0, 0]   # (B, P)
    if inds is None:
        inds = jnp.arange(P)
    return pred[:, inds]


# ------------------------- deterministic parameter init -----------------------
def init_params(key, n_dims, n_positions, n_embd, n_layer):
    E = n_embd
    keys = iter(jax.random.split(key, 8 + 8 * n_layer))

    def nrm(shape):
        return 0.02 * jax.random.normal(next(keys), shape, jnp.float32)

    params = {
        "w_in": nrm((n_dims, E)),
        "b_in": jnp.zeros((1, E), jnp.float32),
        "wpe": nrm((2 * n_positions, E)),
        "lnf_w": jnp.ones((1, E), jnp.float32),
        "lnf_b": jnp.zeros((1, E), jnp.float32),
        "w_out": nrm((E, 1)),
        "b_out": jnp.zeros((1, 1), jnp.float32),
        "layers": [],
    }
    for _ in range(n_layer):
        params["layers"].append({
            "ln1_w": jnp.ones((1, E), jnp.float32),
            "ln1_b": jnp.zeros((1, E), jnp.float32),
            "w_qkv": nrm((E, 3 * E)),
            "b_qkv": jnp.zeros((1, 3 * E), jnp.float32),
            "w_proj": nrm((E, E)),
            "b_proj": jnp.zeros((1, E), jnp.float32),
            "ln2_w": jnp.ones((1, E), jnp.float32),
            "ln2_b": jnp.zeros((1, E), jnp.float32),
            "w_fc": nrm((E, 4 * E)),
            "b_fc": jnp.zeros((1, 4 * E), jnp.float32),
            "w_fcproj": nrm((4 * E, E)),
            "b_fcproj": jnp.zeros((1, E), jnp.float32),
        })
    return params


# ----------------------------- pure-JAX reference -----------------------------
def reference_forward(xs, ys, params, n_head):
    B, P, D = xs.shape
    E = params["w_in"].shape[1]
    T = 2 * P
    hd = E // n_head

    ys_wide = jnp.concatenate(
        [ys[..., None], jnp.zeros((B, P, D - 1), xs.dtype)], axis=2)
    zs = jnp.stack([xs, ys_wide], axis=2).reshape(B, T, D)

    h = zs @ params["w_in"] + params["b_in"] + params["wpe"][:T]
    mask = jnp.tril(jnp.ones((T, T), bool))
    for lp in params["layers"]:
        x = _layer_norm(h, lp["ln1_w"], lp["ln1_b"])
        qkv = x @ lp["w_qkv"] + lp["b_qkv"]
        q, k, v = jnp.split(qkv, 3, axis=-1)
        q = q.reshape(B, T, n_head, hd).transpose(0, 2, 1, 3)
        k = k.reshape(B, T, n_head, hd).transpose(0, 2, 1, 3)
        v = v.reshape(B, T, n_head, hd).transpose(0, 2, 1, 3)
        s = jnp.einsum("bhtd,bhsd->bhts", q, k) / jnp.sqrt(jnp.float32(hd))
        s = jnp.where(mask, s, jnp.float32(-1e30))
        p = jax.nn.softmax(s, axis=-1)
        a = jnp.einsum("bhts,bhsd->bhtd", p, v).transpose(0, 2, 1, 3).reshape(B, T, E)
        h = h + a @ lp["w_proj"] + lp["b_proj"]
        x = _layer_norm(h, lp["ln2_w"], lp["ln2_b"])
        f = _gelu_new(x @ lp["w_fc"] + lp["b_fc"])
        h = h + f @ lp["w_fcproj"] + lp["b_fcproj"]
    x = _layer_norm(h, params["lnf_w"], params["lnf_b"])
    pred = (x @ params["w_out"] + params["b_out"])[:, ::2, 0]
    return pred[:, jnp.arange(P)]


# ----------------------------------- main --------------------------------------
if __name__ == "__main__":
    # Small config consistent with TransformerModel(n_dims, n_positions, ...)
    B, n_dims, n_positions = 2, 8, 8      # points = n_positions -> seq T = 16
    n_embd, n_layer, n_head = 32, 2, 4

    root = jax.random.PRNGKey(0)
    kx, ky, kp = jax.random.split(root, 3)
    xs = jax.random.normal(kx, (B, n_positions, n_dims), jnp.float32)
    ys = jax.random.normal(ky, (B, n_positions), jnp.float32)
    params = init_params(kp, n_dims, n_positions, n_embd, n_layer)

    out = transformer_forward(xs, ys, params, n_head)
    out = jax.block_until_ready(out)

    ref = reference_forward(xs, ys, params, n_head)
    assert out.shape == (B, n_positions), out.shape
    # bf16 MXU operands + approx softmax reciprocal in the kernel; reference is f32.
    err = float(jnp.max(jnp.abs(out - ref)))
    assert err < 1e-2, f"max abs err {err}"

    print("KERNEL_OK")
</pallas_src>

<mosaic_0001>
module attributes {stable_mosaic.version = 11 : i64} {
  func.func @fused_kernel(%arg0: i32, %arg1: i32, %arg2: memref<32x128xbf16, #tpu.memory_space<vmem>>, %arg3: memref<128x128xbf16, #tpu.memory_space<vmem>>, %arg4: memref<32x128xf32, #tpu.memory_space<vmem>>, %arg5: memref<1x8x128xf32, #tpu.memory_space<vmem>>, %arg6: memref<1x128x128xbf16, #tpu.memory_space<vmem>>, %arg7: memref<1x32x128xbf16, #tpu.memory_space<vmem>>, %arg8: memref<1x128x128xbf16, #tpu.memory_space<vmem>>, %arg9: memref<1x128x128xbf16, #tpu.memory_space<vmem>>, %arg10: memref<3x128xf32, #tpu.memory_space<vmem>>, %arg11: memref<1x1x32xf32, #tpu.memory_space<vmem>>, %arg12: memref<32x128xf32, #tpu.memory_space<vmem>>) attributes {dimension_semantics = [#tpu.dimension_semantics<parallel>, #tpu.dimension_semantics<arbitrary>], iteration_bounds = array<i64: 1, 2>, scalar_prefetch = 0 : i64, scratch_operands = 1 : i64, tpu.core_type = #tpu.core_type<tc>, window_params = [{transform_indices = @transform_0, window_bounds = array<i64: 32, 128>}, {pipeline_mode = #tpu.pipeline_mode<synchronous>, transform_indices = @transform_1, window_bounds = array<i64: 128, 128>}, {pipeline_mode = #tpu.pipeline_mode<synchronous>, transform_indices = @transform_2, window_bounds = array<i64: 32, 128>}, {transform_indices = @transform_3, window_bounds = array<i64: 1, 8, 128>}, {transform_indices = @transform_4, window_bounds = array<i64: 1, 128, 128>}, {transform_indices = @transform_5, window_bounds = array<i64: 1, 32, 128>}, {transform_indices = @transform_6, window_bounds = array<i64: 1, 128, 128>}, {transform_indices = @transform_7, window_bounds = array<i64: 1, 128, 128>}, {pipeline_mode = #tpu.pipeline_mode<synchronous>, transform_indices = @transform_8, window_bounds = array<i64: 3, 128>}, {transform_indices = @transform_9, window_bounds = array<i64: 1, 1, 32>}]} {
    %0 = tpu.iota {dimensions = array<i32: 1>} : vector<1x128xi32>
    %c32_i32 = arith.constant 32 : i32
    %1 = vector.broadcast %c32_i32 : i32 to vector<1x128xi32>
    %2 = arith.cmpi slt, %0, %1 : vector<1x128xi32>
    %3 = arith.extui %2 : vector<1x128xi1> to vector<1x128xi32>
    %4 = arith.sitofp %3 : vector<1x128xi32> to vector<1x128xf32>
    %c0_i32 = arith.constant 0 : i32
    %5 = arith.cmpi eq, %arg1, %c0_i32 : i32
    %6 = arith.extui %5 : i1 to i32
    %c0_i32_0 = arith.constant 0 : i32
    %7 = arith.cmpi ne, %6, %c0_i32_0 : i32
    scf.if %7 {
      %c0_77 = arith.constant 0 : index
      %c0_78 = arith.constant 0 : index
      %289 = vector.load %arg2[%c0_77, %c0_78] : memref<32x128xbf16, #tpu.memory_space<vmem>>, vector<32x128xbf16>
      %c0_79 = arith.constant 0 : index
      %c0_80 = arith.constant 0 : index
      %290 = vector.load %arg3[%c0_79, %c0_80] : memref<128x128xbf16, #tpu.memory_space<vmem>>, vector<128x128xbf16>
      %cst_81 = arith.constant dense<0.000000e+00> : vector<32x128xf32>
      %291 = tpu.matmul %289, %290, %cst_81 {dimension_numbers = #tpu.dot_dimension_numbers<[1], [0], [0], [1], [0, 0, 1, 1], [], []>} : vector<32x128xbf16>, vector<128x128xbf16>, vector<32x128xf32> -> vector<32x128xf32>
      %c0_82 = arith.constant 0 : index
      %c0_83 = arith.constant 0 : index
      %292 = vector.load %arg4[%c0_82, %c0_83] : memref<32x128xf32, #tpu.memory_space<vmem>>, vector<32x128xf32>
      %293 = arith.addf %291, %292 : vector<32x128xf32>
      %c0_84 = arith.constant 0 : index
      %c0_85 = arith.constant 0 : index
      %294 = vector.load %arg12[%c0_84, %c0_85] : memref<32x128xf32, #tpu.memory_space<vmem>>, vector<32x128xf32>
      tpu.vector_store %arg12[%c0_84, %c0_85], %293 {strides = array<i32>} : memref<32x128xf32, #tpu.memory_space<vmem>>, vector<32x128xf32>,
    } else {
    }
    %c0 = arith.constant 0 : index
    %c0_1 = arith.constant 0 : index
    %8 = vector.load %arg12[%c0, %c0_1] : memref<32x128xf32, #tpu.memory_space<vmem>>, vector<32x128xf32>
    %c0_2 = arith.constant 0 : index
    %c0_3 = arith.constant 0 : index
    %c0_4 = arith.constant 0 : index
    %9 = vector.load %arg5[%c0_2, %c0_3, %c0_4] : memref<1x8x128xf32, #tpu.memory_space<vmem>>, vector<1x8x128xf32>
    %10 = vector.shape_cast %9 : vector<1x8x128xf32> to vector<8x128xf32>
    %11 = vector.extract_strided_slice %10 {offsets = [0, 0], sizes = [1, 128], strides = [1, 1]} : vector<8x128xf32> to vector<1x128xf32>
    %12 = vector.extract_strided_slice %10 {offsets = [1, 0], sizes = [1, 128], strides = [1, 1]} : vector<8x128xf32> to vector<1x128xf32>
    %13 = vector.extract_strided_slice %10 {offsets = [2, 0], sizes = [1, 128], strides = [1, 1]} : vector<8x128xf32> to vector<1x128xf32>
    %14 = vector.extract_strided_slice %10 {offsets = [3, 0], sizes = [1, 128], strides = [1, 1]} : vector<8x128xf32> to vector<1x128xf32>
    %15 = vector.extract_strided_slice %10 {offsets = [4, 0], sizes = [1, 128], strides = [1, 1]} : vector<8x128xf32> to vector<1x128xf32>
    %16 = vector.extract_strided_slice %10 {offsets = [5, 0], sizes = [1, 128], strides = [1, 1]} : vector<8x128xf32> to vector<1x128xf32>
    %17 = vector.extract_strided_slice %10 {offsets = [6, 0], sizes = [1, 128], strides = [1, 1]} : vector<8x128xf32> to vector<1x128xf32>
    %18 = vector.extract_strided_slice %10 {offsets = [7, 0], sizes = [1, 128], strides = [1, 1]} : vector<8x128xf32> to vector<1x128xf32>
    %cst = arith.constant dense<0.000000e+00> : vector<32xf32>
    %19 = vector.multi_reduction <add>, %8, %cst [1] : vector<32x128xf32> to vector<32xf32>
    %20 = vector.shape_cast %19 : vector<32xf32> to vector<32x1xf32>
    %cst_5 = arith.constant 3.125000e-02 : f32
    %21 = vector.broadcast %cst_5 : f32 to vector<32x1xf32>
    %22 = arith.mulf %20, %21 : vector<32x1xf32>
    %23 = vector.broadcast %22 : vector<32x1xf32> to vector<32x128xf32>
    %24 = arith.subf %8, %23 : vector<32x128xf32>
    %25 = vector.broadcast %4 : vector<1x128xf32> to vector<32x128xf32>
    %26 = arith.mulf %24, %25 : vector<32x128xf32>
    %27 = arith.mulf %26, %26 : vector<32x128xf32>
    %cst_6 = arith.constant dense<0.000000e+00> : vector<32xf32>
    %28 = vector.multi_reduction <add>, %27, %cst_6 [1] : vector<32x128xf32> to vector<32xf32>
    %29 = vector.shape_cast %28 : vector<32xf32> to vector<32x1xf32>
    %cst_7 = arith.constant 3.125000e-02 : f32
    %30 = vector.broadcast %cst_7 : f32 to vector<32x1xf32>
    %31 = arith.mulf %29, %30 : vector<32x1xf32>
    %cst_8 = arith.constant 9.99999974E-6 : f32
    %32 = vector.broadcast %cst_8 : f32 to vector<32x1xf32>
    %33 = arith.addf %31, %32 : vector<32x1xf32>
    %34 = math.rsqrt %33 : vector<32x1xf32>
    %35 = vector.broadcast %34 : vector<32x1xf32> to vector<32x128xf32>
    %36 = arith.mulf %26, %35 : vector<32x128xf32>
    %37 = vector.broadcast %11 : vector<1x128xf32> to vector<32x128xf32>
    %38 = arith.mulf %36, %37 : vector<32x128xf32>
    %39 = vector.broadcast %12 : vector<1x128xf32> to vector<32x128xf32>
    %40 = arith.addf %38, %39 : vector<32x128xf32>
    %41 = arith.truncf %40 : vector<32x128xf32> to vector<32x128xbf16>
    %c0_9 = arith.constant 0 : index
    %c0_10 = arith.constant 0 : index
    %c0_11 = arith.constant 0 : index
    %42 = vector.load %arg6[%c0_9, %c0_10, %c0_11] : memref<1x128x128xbf16, #tpu.memory_space<vmem>>, vector<1x128x128xbf16>
    %43 = vector.shape_cast %42 : vector<1x128x128xbf16> to vector<128x128xbf16>
    %cst_12 = arith.constant dense<0.000000e+00> : vector<32x128xf32>
    %44 = tpu.matmul %41, %43, %cst_12 {dimension_numbers = #tpu.dot_dimension_numbers<[1], [0], [0], [1], [0, 0, 1, 1], [], []>} : vector<32x128xbf16>, vector<128x128xbf16>, vector<32x128xf32> -> vector<32x128xf32>
    %45 = vector.broadcast %13 : vector<1x128xf32> to vector<32x128xf32>
    %46 = arith.addf %44, %45 : vector<32x128xf32>
    %47 = tpu.iota {dimensions = array<i32: 0>} : vector<16x16xi32>
    %48 = tpu.iota {dimensions = array<i32: 1>} : vector<16x16xi32>
    %49 = arith.cmpi sge, %47, %48 : vector<16x16xi32>
    %50 = vector.extract_strided_slice %46 {offsets = [0, 0], sizes = [16, 128], strides = [1, 1]} : vector<32x128xf32> to vector<16x128xf32>
    %51 = vector.extract_strided_slice %50 {offsets = [0, 0], sizes = [16, 8], strides = [1, 1]} : vector<16x128xf32> to vector<16x8xf32>
    %52 = arith.truncf %51 : vector<16x8xf32> to vector<16x8xbf16>
    %53 = vector.extract_strided_slice %50 {offsets = [0, 32], sizes = [16, 8], strides = [1, 1]} : vector<16x128xf32> to vector<16x8xf32>
    %54 = arith.truncf %53 : vector<16x8xf32> to vector<16x8xbf16>
    %55 = vector.extract_strided_slice %50 {offsets = [0, 64], sizes = [16, 8], strides = [1, 1]} : vector<16x128xf32> to vector<16x8xf32>
    %56 = arith.truncf %55 : vector<16x8xf32> to vector<16x8xbf16>
    %cst_13 = arith.constant dense<0.000000e+00> : vector<16x16xf32>
    %57 = tpu.matmul %52, %54, %cst_13 {dimension_numbers = #tpu.dot_dimension_numbers<[1], [1], [0], [0], [0, 0, 1, 0], [], []>} : vector<16x8xbf16>, vector<16x8xbf16>, vector<16x16xf32> -> vector<16x16xf32>
    %cst_14 = arith.constant -1.000000e+30 : f32
    %58 = vector.broadcast %cst_14 : f32 to vector<16x16xf32>
    %59 = arith.select %49, %57, %58 : vector<16x16xi1>, vector<16x16xf32>
    %cst_15 = arith.constant dense<0xFF800000> : vector<16xf32>
    %60 = vector.multi_reduction <maximumf>, %59, %cst_15 [1] : vector<16x16xf32> to vector<16xf32>
    %61 = vector.shape_cast %60 : vector<16xf32> to vector<16x1xf32>
    %62 = vector.broadcast %61 : vector<16x1xf32> to vector<16x16xf32>
    %63 = arith.subf %59, %62 : vector<16x16xf32>
    %64 = math.exp %63 : vector<16x16xf32>
    %cst_16 = arith.constant dense<0.000000e+00> : vector<16xf32>
    %65 = vector.multi_reduction <add>, %64, %cst_16 [1] : vector<16x16xf32> to vector<16xf32>
    %66 = vector.shape_cast %65 : vector<16xf32> to vector<16x1xf32>
    %67 = arith.truncf %64 : vector<16x16xf32> to vector<16x16xbf16>
    %cst_17 = arith.constant dense<0.000000e+00> : vector<16x8xf32>
    %68 = tpu.matmul %67, %56, %cst_17 {dimension_numbers = #tpu.dot_dimension_numbers<[1], [0], [0], [1], [0, 0, 1, 1], [], []>} : vector<16x16xbf16>, vector<16x8xbf16>, vector<16x8xf32> -> vector<16x8xf32>
    %69 = tpu.reciprocal %66 {approx = true} : vector<16x1xf32> -> vector<16x1xf32>
    %70 = vector.broadcast %69 : vector<16x1xf32> to vector<16x8xf32>
    %71 = arith.mulf %68, %70 : vector<16x8xf32>
    %72 = arith.truncf %71 : vector<16x8xf32> to vector<16x8xbf16>
    %73 = vector.extract_strided_slice %50 {offsets = [0, 8], sizes = [16, 8], strides = [1, 1]} : vector<16x128xf32> to vector<16x8xf32>
    %74 = arith.truncf %73 : vector<16x8xf32> to vector<16x8xbf16>
    %75 = vector.extract_strided_slice %50 {offsets = [0, 40], sizes = [16, 8], strides = [1, 1]} : vector<16x128xf32> to vector<16x8xf32>
    %76 = arith.truncf %75 : vector<16x8xf32> to vector<16x8xbf16>
    %77 = vector.extract_strided_slice %50 {offsets = [0, 72], sizes = [16, 8], strides = [1, 1]} : vector<16x128xf32> to vector<16x8xf32>
    %78 = arith.truncf %77 : vector<16x8xf32> to vector<16x8xbf16>
    %cst_18 = arith.constant dense<0.000000e+00> : vector<16x16xf32>
    %79 = tpu.matmul %74, %76, %cst_18 {dimension_numbers = #tpu.dot_dimension_numbers<[1], [1], [0], [0], [0, 0, 1, 0], [], []>} : vector<16x8xbf16>, vector<16x8xbf16>, vector<16x16xf32> -> vector<16x16xf32>
    %cst_19 = arith.constant -1.000000e+30 : f32
    %80 = vector.broadcast %cst_19 : f32 to vector<16x16xf32>
    %81 = arith.select %49, %79, %80 : vector<16x16xi1>, vector<16x16xf32>
    %cst_20 = arith.constant dense<0xFF800000> : vector<16xf32>
    %82 = vector.multi_reduction <maximumf>, %81, %cst_20 [1] : vector<16x16xf32> to vector<16xf32>
    %83 = vector.shape_cast %82 : vector<16xf32> to vector<16x1xf32>
    %84 = vector.broadcast %83 : vector<16x1xf32> to vector<16x16xf32>
    %85 = arith.subf %81, %84 : vector<16x16xf32>
    %86 = math.exp %85 : vector<16x16xf32>
    %cst_21 = arith.constant dense<0.000000e+00> : vector<16xf32>
    %87 = vector.multi_reduction <add>, %86, %cst_21 [1] : vector<16x16xf32> to vector<16xf32>
    %88 = vector.shape_cast %87 : vector<16xf32> to vector<16x1xf32>
    %89 = arith.truncf %86 : vector<16x16xf32> to vector<16x16xbf16>
    %cst_22 = arith.constant dense<0.000000e+00> : vector<16x8xf32>
    %90 = tpu.matmul %89, %78, %cst_22 {dimension_numbers = #tpu.dot_dimension_numbers<[1], [0], [0], [1], [0, 0, 1, 1], [], []>} : vector<16x16xbf16>, vector<16x8xbf16>, vector<16x8xf32> -> vector<16x8xf32>
    %91 = tpu.reciprocal %88 {approx = true} : vector<16x1xf32> -> vector<16x1xf32>
    %92 = vector.broadcast %91 : vector<16x1xf32> to vector<16x8xf32>
    %93 = arith.mulf %90, %92 : vector<16x8xf32>
    %94 = arith.truncf %93 : vector<16x8xf32> to vector<16x8xbf16>
    %95 = vector.extract_strided_slice %50 {offsets = [0, 16], sizes = [16, 8], strides = [1, 1]} : vector<16x128xf32> to vector<16x8xf32>
    %96 = arith.truncf %95 : vector<16x8xf32> to vector<16x8xbf16>
    %97 = vector.extract_strided_slice %50 {offsets = [0, 48], sizes = [16, 8], strides = [1, 1]} : vector<16x128xf32> to vector<16x8xf32>
    %98 = arith.truncf %97 : vector<16x8xf32> to vector<16x8xbf16>
    %99 = vector.extract_strided_slice %50 {offsets = [0, 80], sizes = [16, 8], strides = [1, 1]} : vector<16x128xf32> to vector<16x8xf32>
    %100 = arith.truncf %99 : vector<16x8xf32> to vector<16x8xbf16>
    %cst_23 = arith.constant dense<0.000000e+00> : vector<16x16xf32>
    %101 = tpu.matmul %96, %98, %cst_23 {dimension_numbers = #tpu.dot_dimension_numbers<[1], [1], [0], [0], [0, 0, 1, 0], [], []>} : vector<16x8xbf16>, vector<16x8xbf16>, vector<16x16xf32> -> vector<16x16xf32>
    %cst_24 = arith.constant -1.000000e+30 : f32
    %102 = vector.broadcast %cst_24 : f32 to vector<16x16xf32>
    %103 = arith.select %49, %101, %102 : vector<16x16xi1>, vector<16x16xf32>
    %cst_25 = arith.constant dense<0xFF800000> : vector<16xf32>
    %104 = vector.multi_reduction <maximumf>, %103, %cst_25 [1] : vector<16x16xf32> to vector<16xf32>
    %105 = vector.shape_cast %104 : vector<16xf32> to vector<16x1xf32>
    %106 = vector.broadcast %105 : vector<16x1xf32> to vector<16x16xf32>
    %107 = arith.subf %103, %106 : vector<16x16xf32>
    %108 = math.exp %107 : vector<16x16xf32>
    %cst_26 = arith.constant dense<0.000000e+00> : vector<16xf32>
    %109 = vector.multi_reduction <add>, %108, %cst_26 [1] : vector<16x16xf32> to vector<16xf32>
    %110 = vector.shape_cast %109 : vector<16xf32> to vector<16x1xf32>
    %111 = arith.truncf %108 : vector<16x16xf32> to vector<16x16xbf16>
    %cst_27 = arith.constant dense<0.000000e+00> : vector<16x8xf32>
    %112 = tpu.matmul %111, %100, %cst_27 {dimension_numbers = #tpu.dot_dimension_numbers<[1], [0], [0], [1], [0, 0, 1, 1], [], []>} : vector<16x16xbf16>, vector<16x8xbf16>, vector<16x8xf32> -> vector<16x8xf32>
    %113 = tpu.reciprocal %110 {approx = true} : vector<16x1xf32> -> vector<16x1xf32>
    %114 = vector.broadcast %113 : vector<16x1xf32> to vector<16x8xf32>
    %115 = arith.mulf %112, %114 : vector<16x8xf32>
    %116 = arith.truncf %115 : vector<16x8xf32> to vector<16x8xbf16>
    %117 = vector.extract_strided_slice %50 {offsets = [0, 24], sizes = [16, 8], strides = [1, 1]} : vector<16x128xf32> to vector<16x8xf32>
    %118 = arith.truncf %117 : vector<16x8xf32> to vector<16x8xbf16>
    %119 = vector.extract_strided_slice %50 {offsets = [0, 56], sizes = [16, 8], strides = [1, 1]} : vector<16x128xf32> to vector<16x8xf32>
    %120 = arith.truncf %119 : vector<16x8xf32> to vector<16x8xbf16>
    %121 = vector.extract_strided_slice %50 {offsets = [0, 88], sizes = [16, 8], strides = [1, 1]} : vector<16x128xf32> to vector<16x8xf32>
    %122 = arith.truncf %121 : vector<16x8xf32> to vector<16x8xbf16>
    %cst_28 = arith.constant dense<0.000000e+00> : vector<16x16xf32>
    %123 = tpu.matmul %118, %120, %cst_28 {dimension_numbers = #tpu.dot_dimension_numbers<[1], [1], [0], [0], [0, 0, 1, 0], [], []>} : vector<16x8xbf16>, vector<16x8xbf16>, vector<16x16xf32> -> vector<16x16xf32>
    %cst_29 = arith.constant -1.000000e+30 : f32
    %124 = vector.broadcast %cst_29 : f32 to vector<16x16xf32>
    %125 = arith.select %49, %123, %124 : vector<16x16xi1>, vector<16x16xf32>
    %cst_30 = arith.constant dense<0xFF800000> : vector<16xf32>
    %126 = vector.multi_reduction <maximumf>, %125, %cst_30 [1] : vector<16x16xf32> to vector<16xf32>
    %127 = vector.shape_cast %126 : vector<16xf32> to vector<16x1xf32>
    %128 = vector.broadcast %127 : vector<16x1xf32> to vector<16x16xf32>
    %129 = arith.subf %125, %128 : vector<16x16xf32>
    %130 = math.exp %129 : vector<16x16xf32>
    %cst_31 = arith.constant dense<0.000000e+00> : vector<16xf32>
    %131 = vector.multi_reduction <add>, %130, %cst_31 [1] : vector<16x16xf32> to vector<16xf32>
    %132 = vector.shape_cast %131 : vector<16xf32> to vector<16x1xf32>
    %133 = arith.truncf %130 : vector<16x16xf32> to vector<16x16xbf16>
    %cst_32 = arith.constant dense<0.000000e+00> : vector<16x8xf32>
    %134 = tpu.matmul %133, %122, %cst_32 {dimension_numbers = #tpu.dot_dimension_numbers<[1], [0], [0], [1], [0, 0, 1, 1], [], []>} : vector<16x16xbf16>, vector<16x8xbf16>, vector<16x8xf32> -> vector<16x8xf32>
    %135 = tpu.reciprocal %132 {approx = true} : vector<16x1xf32> -> vector<16x1xf32>
    %136 = vector.broadcast %135 : vector<16x1xf32> to vector<16x8xf32>
    %137 = arith.mulf %134, %136 : vector<16x8xf32>
    %138 = arith.truncf %137 : vector<16x8xf32> to vector<16x8xbf16>
    %139 = tpu.concatenate %72, %94, %116, %138 in 1 : vector<16x8xbf16>, vector<16x8xbf16>, vector<16x8xbf16>, vector<16x8xbf16> -> vector<16x32xbf16>
    %140 = vector.extract_strided_slice %46 {offsets = [16, 0], sizes = [16, 128], strides = [1, 1]} : vector<32x128xf32> to vector<16x128xf32>
    %141 = vector.extract_strided_slice %140 {offsets = [0, 0], sizes = [16, 8], strides = [1, 1]} : vector<16x128xf32> to vector<16x8xf32>
    %142 = arith.truncf %141 : vector<16x8xf32> to vector<16x8xbf16>
    %143 = vector.extract_strided_slice %140 {offsets = [0, 32], sizes = [16, 8], strides = [1, 1]} : vector<16x128xf32> to vector<16x8xf32>
    %144 = arith.truncf %143 : vector<16x8xf32> to vector<16x8xbf16>
    %145 = vector.extract_strided_slice %140 {offsets = [0, 64], sizes = [16, 8], strides = [1, 1]} : vector<16x128xf32> to vector<16x8xf32>
    %146 = arith.truncf %145 : vector<16x8xf32> to vector<16x8xbf16>
    %cst_33 = arith.constant dense<0.000000e+00> : vector<16x16xf32>
    %147 = tpu.matmul %142, %144, %cst_33 {dimension_numbers = #tpu.dot_dimension_numbers<[1], [1], [0], [0], [0, 0, 1, 0], [], []>} : vector<16x8xbf16>, vector<16x8xbf16>, vector<16x16xf32> -> vector<16x16xf32>
    %cst_34 = arith.constant -1.000000e+30 : f32
    %148 = vector.broadcast %cst_34 : f32 to vector<16x16xf32>
    %149 = arith.select %49, %147, %148 : vector<16x16xi1>, vector<16x16xf32>
    %cst_35 = arith.constant dense<0xFF800000> : vector<16xf32>
    %150 = vector.multi_reduction <maximumf>, %149, %cst_35 [1] : vector<16x16xf32> to vector<16xf32>
    %151 = vector.shape_cast %150 : vector<16xf32> to vector<16x1xf32>
    %152 = vector.broadcast %151 : vector<16x1xf32> to vector<16x16xf32>
    %153 = arith.subf %149, %152 : vector<16x16xf32>
    %154 = math.exp %153 : vector<16x16xf32>
    %cst_36 = arith.constant dense<0.000000e+00> : vector<16xf32>
    %155 = vector.multi_reduction <add>, %154, %cst_36 [1] : vector<16x16xf32> to vector<16xf32>
    %156 = vector.shape_cast %155 : vector<16xf32> to vector<16x1xf32>
    %157 = arith.truncf %154 : vector<16x16xf32> to vector<16x16xbf16>
    %cst_37 = arith.constant dense<0.000000e+00> : vector<16x8xf32>
    %158 = tpu.matmul %157, %146, %cst_37 {dimension_numbers = #tpu.dot_dimension_numbers<[1], [0], [0], [1], [0, 0, 1, 1], [], []>} : vector<16x16xbf16>, vector<16x8xbf16>, vector<16x8xf32> -> vector<16x8xf32>
    %159 = tpu.reciprocal %156 {approx = true} : vector<16x1xf32> -> vector<16x1xf32>
    %160 = vector.broadcast %159 : vector<16x1xf32> to vector<16x8xf32>
    %161 = arith.mulf %158, %160 : vector<16x8xf32>
    %162 = arith.truncf %161 : vector<16x8xf32> to vector<16x8xbf16>
    %163 = vector.extract_strided_slice %140 {offsets = [0, 8], sizes = [16, 8], strides = [1, 1]} : vector<16x128xf32> to vector<16x8xf32>
    %164 = arith.truncf %163 : vector<16x8xf32> to vector<16x8xbf16>
    %165 = vector.extract_strided_slice %140 {offsets = [0, 40], sizes = [16, 8], strides = [1, 1]} : vector<16x128xf32> to vector<16x8xf32>
    %166 = arith.truncf %165 : vector<16x8xf32> to vector<16x8xbf16>
    %167 = vector.extract_strided_slice %140 {offsets = [0, 72], sizes = [16, 8], strides = [1, 1]} : vector<16x128xf32> to vector<16x8xf32>
    %168 = arith.truncf %167 : vector<16x8xf32> to vector<16x8xbf16>
    %cst_38 = arith.constant dense<0.000000e+00> : vector<16x16xf32>
    %169 = tpu.matmul %164, %166, %cst_38 {dimension_numbers = #tpu.dot_dimension_numbers<[1], [1], [0], [0], [0, 0, 1, 0], [], []>} : vector<16x8xbf16>, vector<16x8xbf16>, vector<16x16xf32> -> vector<16x16xf32>
    %cst_39 = arith.constant -1.000000e+30 : f32
    %170 = vector.broadcast %cst_39 : f32 to vector<16x16xf32>
    %171 = arith.select %49, %169, %170 : vector<16x16xi1>, vector<16x16xf32>
    %cst_40 = arith.constant dense<0xFF800000> : vector<16xf32>
    %172 = vector.multi_reduction <maximumf>, %171, %cst_40 [1] : vector<16x16xf32> to vector<16xf32>
    %173 = vector.shape_cast %172 : vector<16xf32> to vector<16x1xf32>
    %174 = vector.broadcast %173 : vector<16x1xf32> to vector<16x16xf32>
    %175 = arith.subf %171, %174 : vector<16x16xf32>
    %176 = math.exp %175 : vector<16x16xf32>
    %cst_41 = arith.constant dense<0.000000e+00> : vector<16xf32>
    %177 = vector.multi_reduction <add>, %176, %cst_41 [1] : vector<16x16xf32> to vector<16xf32>
    %178 = vector.shape_cast %177 : vector<16xf32> to vector<16x1xf32>
    %179 = arith.truncf %176 : vector<16x16xf32> to vector<16x16xbf16>
    %cst_42 = arith.constant dense<0.000000e+00> : vector<16x8xf32>
    %180 = tpu.matmul %179, %168, %cst_42 {dimension_numbers = #tpu.dot_dimension_numbers<[1], [0], [0], [1], [0, 0, 1, 1], [], []>} : vector<16x16xbf16>, vector<16x8xbf16>, vector<16x8xf32> -> vector<16x8xf32>
    %181 = tpu.reciprocal %178 {approx = true} : vector<16x1xf32> -> vector<16x1xf32>
    %182 = vector.broadcast %181 : vector<16x1xf32> to vector<16x8xf32>
    %183 = arith.mulf %180, %182 : vector<16x8xf32>
    %184 = arith.truncf %183 : vector<16x8xf32> to vector<16x8xbf16>
    %185 = vector.extract_strided_slice %140 {offsets = [0, 16], sizes = [16, 8], strides = [1, 1]} : vector<16x128xf32> to vector<16x8xf32>
    %186 = arith.truncf %185 : vector<16x8xf32> to vector<16x8xbf16>
    %187 = vector.extract_strided_slice %140 {offsets = [0, 48], sizes = [16, 8], strides = [1, 1]} : vector<16x128xf32> to vector<16x8xf32>
    %188 = arith.truncf %187 : vector<16x8xf32> to vector<16x8xbf16>
    %189 = vector.extract_strided_slice %140 {offsets = [0, 80], sizes = [16, 8], strides = [1, 1]} : vector<16x128xf32> to vector<16x8xf32>
    %190 = arith.truncf %189 : vector<16x8xf32> to vector<16x8xbf16>
    %cst_43 = arith.constant dense<0.000000e+00> : vector<16x16xf32>
    %191 = tpu.matmul %186, %188, %cst_43 {dimension_numbers = #tpu.dot_dimension_numbers<[1], [1], [0], [0], [0, 0, 1, 0], [], []>} : vector<16x8xbf16>, vector<16x8xbf16>, vector<16x16xf32> -> vector<16x16xf32>
    %cst_44 = arith.constant -1.000000e+30 : f32
    %192 = vector.broadcast %cst_44 : f32 to vector<16x16xf32>
    %193 = arith.select %49, %191, %192 : vector<16x16xi1>, vector<16x16xf32>
    %cst_45 = arith.constant dense<0xFF800000> : vector<16xf32>
    %194 = vector.multi_reduction <maximumf>, %193, %cst_45 [1] : vector<16x16xf32> to vector<16xf32>
    %195 = vector.shape_cast %194 : vector<16xf32> to vector<16x1xf32>
    %196 = vector.broadcast %195 : vector<16x1xf32> to vector<16x16xf32>
    %197 = arith.subf %193, %196 : vector<16x16xf32>
    %198 = math.exp %197 : vector<16x16xf32>
    %cst_46 = arith.constant dense<0.000000e+00> : vector<16xf32>
    %199 = vector.multi_reduction <add>, %198, %cst_46 [1] : vector<16x16xf32> to vector<16xf32>
    %200 = vector.shape_cast %199 : vector<16xf32> to vector<16x1xf32>
    %201 = arith.truncf %198 : vector<16x16xf32> to vector<16x16xbf16>
    %cst_47 = arith.constant dense<0.000000e+00> : vector<16x8xf32>
    %202 = tpu.matmul %201, %190, %cst_47 {dimension_numbers = #tpu.dot_dimension_numbers<[1], [0], [0], [1], [0, 0, 1, 1], [], []>} : vector<16x16xbf16>, vector<16x8xbf16>, vector<16x8xf32> -> vector<16x8xf32>
    %203 = tpu.reciprocal %200 {approx = true} : vector<16x1xf32> -> vector<16x1xf32>
    %204 = vector.broadcast %203 : vector<16x1xf32> to vector<16x8xf32>
    %205 = arith.mulf %202, %204 : vector<16x8xf32>
    %206 = arith.truncf %205 : vector<16x8xf32> to vector<16x8xbf16>
    %207 = vector.extract_strided_slice %140 {offsets = [0, 24], sizes = [16, 8], strides = [1, 1]} : vector<16x128xf32> to vector<16x8xf32>
    %208 = arith.truncf %207 : vector<16x8xf32> to vector<16x8xbf16>
    %209 = vector.extract_strided_slice %140 {offsets = [0, 56], sizes = [16, 8], strides = [1, 1]} : vector<16x128xf32> to vector<16x8xf32>
    %210 = arith.truncf %209 : vector<16x8xf32> to vector<16x8xbf16>
    %211 = vector.extract_strided_slice %140 {offsets = [0, 88], sizes = [16, 8], strides = [1, 1]} : vector<16x128xf32> to vector<16x8xf32>
    %212 = arith.truncf %211 : vector<16x8xf32> to vector<16x8xbf16>
    %cst_48 = arith.constant dense<0.000000e+00> : vector<16x16xf32>
    %213 = tpu.matmul %208, %210, %cst_48 {dimension_numbers = #tpu.dot_dimension_numbers<[1], [1], [0], [0], [0, 0, 1, 0], [], []>} : vector<16x8xbf16>, vector<16x8xbf16>, vector<16x16xf32> -> vector<16x16xf32>
    %cst_49 = arith.constant -1.000000e+30 : f32
    %214 = vector.broadcast %cst_49 : f32 to vector<16x16xf32>
    %215 = arith.select %49, %213, %214 : vector<16x16xi1>, vector<16x16xf32>
    %cst_50 = arith.constant dense<0xFF800000> : vector<16xf32>
    %216 = vector.multi_reduction <maximumf>, %215, %cst_50 [1] : vector<16x16xf32> to vector<16xf32>
    %217 = vector.shape_cast %216 : vector<16xf32> to vector<16x1xf32>
    %218 = vector.broadcast %217 : vector<16x1xf32> to vector<16x16xf32>
    %219 = arith.subf %215, %218 : vector<16x16xf32>
    %220 = math.exp %219 : vector<16x16xf32>
    %cst_51 = arith.constant dense<0.000000e+00> : vector<16xf32>
    %221 = vector.multi_reduction <add>, %220, %cst_51 [1] : vector<16x16xf32> to vector<16xf32>
    %222 = vector.shape_cast %221 : vector<16xf32> to vector<16x1xf32>
    %223 = arith.truncf %220 : vector<16x16xf32> to vector<16x16xbf16>
    %cst_52 = arith.constant dense<0.000000e+00> : vector<16x8xf32>
    %224 = tpu.matmul %223, %212, %cst_52 {dimension_numbers = #tpu.dot_dimension_numbers<[1], [0], [0], [1], [0, 0, 1, 1], [], []>} : vector<16x16xbf16>, vector<16x8xbf16>, vector<16x8xf32> -> vector<16x8xf32>
    %225 = tpu.reciprocal %222 {approx = true} : vector<16x1xf32> -> vector<16x1xf32>
    %226 = vector.broadcast %225 : vector<16x1xf32> to vector<16x8xf32>
    %227 = arith.mulf %224, %226 : vector<16x8xf32>
    %228 = arith.truncf %227 : vector<16x8xf32> to vector<16x8xbf16>
    %229 = tpu.concatenate %162, %184, %206, %228 in 1 : vector<16x8xbf16>, vector<16x8xbf16>, vector<16x8xbf16>, vector<16x8xbf16> -> vector<16x32xbf16>
    %230 = tpu.concatenate %139, %229 in 0 : vector<16x32xbf16>, vector<16x32xbf16> -> vector<32x32xbf16>
    %c0_53 = arith.constant 0 : index
    %c0_54 = arith.constant 0 : index
    %c0_55 = arith.constant 0 : index
    %231 = vector.load %arg7[%c0_53, %c0_54, %c0_55] : memref<1x32x128xbf16, #tpu.memory_space<vmem>>, vector<1x32x128xbf16>
    %232 = vector.shape_cast %231 : vector<1x32x128xbf16> to vector<32x128xbf16>
    %cst_56 = arith.constant dense<0.000000e+00> : vector<32x128xf32>
    %233 = tpu.matmul %230, %232, %cst_56 {dimension_numbers = #tpu.dot_dimension_numbers<[1], [0], [0], [1], [0, 0, 1, 1], [], []>} : vector<32x32xbf16>, vector<32x128xbf16>, vector<32x128xf32> -> vector<32x128xf32>
    %234 = arith.addf %8, %233 : vector<32x128xf32>
    %235 = vector.broadcast %14 : vector<1x128xf32> to vector<32x128xf32>
    %236 = arith.addf %234, %235 : vector<32x128xf32>
    %cst_57 = arith.constant dense<0.000000e+00> : vector<32xf32>
    %237 = vector.multi_reduction <add>, %236, %cst_57 [1] : vector<32x128xf32> to vector<32xf32>
    %238 = vector.shape_cast %237 : vector<32xf32> to vector<32x1xf32>
    %cst_58 = arith.constant 3.125000e-02 : f32
    %239 = vector.broadcast %cst_58 : f32 to vector<32x1xf32>
    %240 = arith.mulf %238, %239 : vector<32x1xf32>
    %241 = vector.broadcast %240 : vector<32x1xf32> to vector<32x128xf32>
    %242 = arith.subf %236, %241 : vector<32x128xf32>
    %243 = vector.broadcast %4 : vector<1x128xf32> to vector<32x128xf32>
    %244 = arith.mulf %242, %243 : vector<32x128xf32>
    %245 = arith.mulf %244, %244 : vector<32x128xf32>
    %cst_59 = arith.constant dense<0.000000e+00> : vector<32xf32>
    %246 = vector.multi_reduction <add>, %245, %cst_59 [1] : vector<32x128xf32> to vector<32xf32>
    %247 = vector.shape_cast %246 : vector<32xf32> to vector<32x1xf32>
    %cst_60 = arith.constant 3.125000e-02 : f32
    %248 = vector.broadcast %cst_60 : f32 to vector<32x1xf32>
    %249 = arith.mulf %247, %248 : vector<32x1xf32>
    %cst_61 = arith.constant 9.99999974E-6 : f32
    %250 = vector.broadcast %cst_61 : f32 to vector<32x1xf32>
    %251 = arith.addf %249, %250 : vector<32x1xf32>
    %252 = math.rsqrt %251 : vector<32x1xf32>
    %253 = vector.broadcast %252 : vector<32x1xf32> to vector<32x128xf32>
    %254 = arith.mulf %244, %253 : vector<32x128xf32>
    %255 = vector.broadcast %15 : vector<1x128xf32> to vector<32x128xf32>
    %256 = arith.mulf %254, %255 : vector<32x128xf32>
    %257 = vector.broadcast %16 : vector<1x128xf32> to vector<32x128xf32>
    %258 = arith.addf %256, %257 : vector<32x128xf32>
    %259 = arith.truncf %258 : vector<32x128xf32> to vector<32x128xbf16>
    %c0_62 = arith.constant 0 : index
    %c0_63 = arith.constant 0 : index
    %c0_64 = arith.constant 0 : index
    %260 = vector.load %arg8[%c0_62, %c0_63, %c0_64] : memref<1x128x128xbf16, #tpu.memory_space<vmem>>, vector<1x128x128xbf16>
    %261 = vector.shape_cast %260 : vector<1x128x128xbf16> to vector<128x128xbf16>
    %cst_65 = arith.constant dense<0.000000e+00> : vector<32x128xf32>
    %262 = tpu.matmul %259, %261, %cst_65 {dimension_numbers = #tpu.dot_dimension_numbers<[1], [0], [0], [1], [0, 0, 1, 1], [], []>} : vector<32x128xbf16>, vector<128x128xbf16>, vector<32x128xf32> -> vector<32x128xf32>
    %263 = vector.broadcast %17 : vector<1x128xf32> to vector<32x128xf32>
    %264 = arith.addf %262, %263 : vector<32x128xf32>
    %cst_66 = arith.constant 5.000000e-01 : f32
    %265 = vector.broadcast %cst_66 : f32 to vector<32x128xf32>
    %266 = arith.mulf %265, %264 : vector<32x128xf32>
    %cst_67 = arith.constant 4.471500e-02 : f32
    %267 = vector.broadcast %cst_67 : f32 to vector<32x128xf32>
    %268 = arith.mulf %267, %264 : vector<32x128xf32>
    %269 = arith.mulf %268, %264 : vector<32x128xf32>
    %270 = arith.mulf %269, %264 : vector<32x128xf32>
    %271 = arith.addf %264, %270 : vector<32x128xf32>
    %cst_68 = arith.constant 0.797884583 : f32
    %272 = vector.broadcast %cst_68 : f32 to vector<32x128xf32>
    %273 = arith.mulf %272, %271 : vector<32x128xf32>
    %274 = math.tanh %273 : vector<32x128xf32>
    %cst_69 = arith.constant 1.000000e+00 : f32
    %275 = vector.broadcast %cst_69 : f32 to vector<32x128xf32>
    %276 = arith.addf %275, %274 : vector<32x128xf32>
    %277 = arith.mulf %266, %276 : vector<32x128xf32>
    %278 = arith.truncf %277 : vector<32x128xf32> to vector<32x128xbf16>
    %c0_70 = arith.constant 0 : index
    %c0_71 = arith.constant 0 : index
    %c0_72 = arith.constant 0 : index
    %279 = vector.load %arg9[%c0_70, %c0_71, %c0_72] : memref<1x128x128xbf16, #tpu.memory_space<vmem>>, vector<1x128x128xbf16>
    %280 = vector.shape_cast %279 : vector<1x128x128xbf16> to vector<128x128xbf16>
    %cst_73 = arith.constant dense<0.000000e+00> : vector<32x128xf32>
    %281 = tpu.matmul %278, %280, %cst_73 {dimension_numbers = #tpu.dot_dimension_numbers<[1], [0], [0], [1], [0, 0, 1, 1], [], []>} : vector<32x128xbf16>, vector<128x128xbf16>, vector<32x128xf32> -> vector<32x128xf32>
    %282 = arith.addf %236, %281 : vector<32x128xf32>
    %283 = vector.broadcast %18 : vector<1x128xf32> to vector<32x128xf32>
    %284 = arith.addf %282, %283 : vector<32x128xf32>
    %c0_74 = arith.constant 0 : index
    %c0_75 = arith.constant 0 : index
    %285 = vector.load %arg12[%c0_74, %c0_75] : memref<32x128xf32, #tpu.memory_space<vmem>>, vector<32x128xf32>
    tpu.vector_store %arg12[%c0_74, %c0_75], %284 {strides = array<i32>} : memref<32x128xf32, #tpu.memory_space<vmem>>, vector<32x128xf32>,
    %c1_i32 = arith.constant 1 : i32
    %286 = arith.cmpi eq, %arg1, %c1_i32 : i32
    %287 = arith.extui %286 : i1 to i32
    %c0_i32_76 = arith.constant 0 : i32
    %288 = arith.cmpi ne, %287, %c0_i32_76 : i32
    scf.if %288 {
      %c0_77 = arith.constant 0 : index
      %c0_78 = arith.constant 0 : index
      %289 = vector.load %arg10[%c0_77, %c0_78] : memref<3x128xf32, #tpu.memory_space<vmem>>, vector<3x128xf32>
      %290 = vector.extract_strided_slice %289 {offsets = [0, 0], sizes = [1, 128], strides = [1, 1]} : vector<3x128xf32> to vector<1x128xf32>
      %291 = vector.extract_strided_slice %289 {offsets = [1, 0], sizes = [1, 128], strides = [1, 1]} : vector<3x128xf32> to vector<1x128xf32>
      %cst_79 = arith.constant dense<0.000000e+00> : vector<32xf32>
      %292 = vector.multi_reduction <add>, %284, %cst_79 [1] : vector<32x128xf32> to vector<32xf32>
      %293 = vector.shape_cast %292 : vector<32xf32> to vector<32x1xf32>
      %cst_80 = arith.constant 3.125000e-02 : f32
      %294 = vector.broadcast %cst_80 : f32 to vector<32x1xf32>
      %295 = arith.mulf %293, %294 : vector<32x1xf32>
      %296 = vector.broadcast %295 : vector<32x1xf32> to vector<32x128xf32>
      %297 = arith.subf %284, %296 : vector<32x128xf32>
      %298 = vector.broadcast %4 : vector<1x128xf32> to vector<32x128xf32>
      %299 = arith.mulf %297, %298 : vector<32x128xf32>
      %300 = arith.mulf %299, %299 : vector<32x128xf32>
      %cst_81 = arith.constant dense<0.000000e+00> : vector<32xf32>
      %301 = vector.multi_reduction <add>, %300, %cst_81 [1] : vector<32x128xf32> to vector<32xf32>
      %302 = vector.shape_cast %301 : vector<32xf32> to vector<32x1xf32>
      %cst_82 = arith.constant 3.125000e-02 : f32
      %303 = vector.broadcast %cst_82 : f32 to vector<32x1xf32>
      %304 = arith.mulf %302, %303 : vector<32x1xf32>
      %cst_83 = arith.constant 9.99999974E-6 : f32
      %305 = vector.broadcast %cst_83 : f32 to vector<32x1xf32>
      %306 = arith.addf %304, %305 : vector<32x1xf32>
      %307 = math.rsqrt %306 : vector<32x1xf32>
      %308 = vector.broadcast %307 : vector<32x1xf32> to vector<32x128xf32>
      %309 = arith.mulf %299, %308 : vector<32x128xf32>
      %310 = vector.broadcast %290 : vector<1x128xf32> to vector<32x128xf32>
      %311 = arith.mulf %309, %310 : vector<32x128xf32>
      %312 = vector.broadcast %291 : vector<1x128xf32> to vector<32x128xf32>
      %313 = arith.addf %311, %312 : vector<32x128xf32>
      %314 = vector.extract_strided_slice %289 {offsets = [2, 0], sizes = [1, 128], strides = [1, 1]} : vector<3x128xf32> to vector<1x128xf32>
      %cst_84 = arith.constant dense<0.000000e+00> : vector<1x32xf32>
      %315 = tpu.matmul %314, %313, %cst_84 {dimension_numbers = #tpu.dot_dimension_numbers<[1], [1], [0], [0], [0, 0, 1, 0], [], []>} : vector<1x128xf32>, vector<32x128xf32>, vector<1x32xf32> -> vector<1x32xf32>
      %c0_85 = arith.constant 0 : index
      %c0_86 = arith.constant 0 : index
      %c0_87 = arith.constant 0 : index
      %316 = vector.load %arg11[%c0_85, %c0_86, %c0_87] : memref<1x1x32xf32, #tpu.memory_space<vmem>>, vector<1x1x32xf32>
      %317 = vector.shape_cast %316 : vector<1x1x32xf32> to vector<1x32xf32>
      %318 = vector.shape_cast %315 : vector<1x32xf32> to vector<1x1x32xf32>
      tpu.vector_store %arg11[%c0_85, %c0_86, %c0_87], %318 {strides = array<i32>} : memref<1x1x32xf32, #tpu.memory_space<vmem>>, vector<1x1x32xf32>,
    } else {
    }
    return
  }
  func.func @transform_0(%arg0: i32, %arg1: i32) -> (i32, i32) {
    %c0_i32 = arith.constant 0 : i32
    %c0_i32_0 = arith.constant 0 : i32
    return %arg0, %c0_i32 : i32, i32
  }
  func.func @transform_1(%arg0: i32, %arg1: i32) -> (i32, i32) {
    %c0_i32 = arith.constant 0 : i32
    %c0_i32_0 = arith.constant 0 : i32
    %c0_i32_1 = arith.constant 0 : i32
    return %c0_i32, %c0_i32_0 : i32, i32
  }
  func.func @transform_2(%arg0: i32, %arg1: i32) -> (i32, i32) {
    %c0_i32 = arith.constant 0 : i32
    %c0_i32_0 = arith.constant 0 : i32
    %c0_i32_1 = arith.constant 0 : i32
    return %c0_i32, %c0_i32_0 : i32, i32
  }
  func.func @transform_3(%arg0: i32, %arg1: i32) -> (i32, i32, i32) {
    %c0_i32 = arith.constant 0 : i32
    %c0_i32_0 = arith.constant 0 : i32
    %c0_i32_1 = arith.constant 0 : i32
    return %arg1, %c0_i32, %c0_i32_0 : i32, i32, i32
  }
  func.func @transform_4(%arg0: i32, %arg1: i32) -> (i32, i32, i32) {
    %c0_i32 = arith.constant 0 : i32
    %c0_i32_0 = arith.constant 0 : i32
    %c0_i32_1 = arith.constant 0 : i32
    return %arg1, %c0_i32, %c0_i32_0 : i32, i32, i32
  }
  func.func @transform_5(%arg0: i32, %arg1: i32) -> (i32, i32, i32) {
    %c0_i32 = arith.constant 0 : i32
    %c0_i32_0 = arith.constant 0 : i32
    %c0_i32_1 = arith.constant 0 : i32
    return %arg1, %c0_i32, %c0_i32_0 : i32, i32, i32
  }
  func.func @transform_6(%arg0: i32, %arg1: i32) -> (i32, i32, i32) {
    %c0_i32 = arith.constant 0 : i32
    %c0_i32_0 = arith.constant 0 : i32
    %c0_i32_1 = arith.constant 0 : i32
    return %arg1, %c0_i32, %c0_i32_0 : i32, i32, i32
  }
  func.func @transform_7(%arg0: i32, %arg1: i32) -> (i32, i32, i32) {
    %c0_i32 = arith.constant 0 : i32
    %c0_i32_0 = arith.constant 0 : i32
    %c0_i32_1 = arith.constant 0 : i32
    return %arg1, %c0_i32, %c0_i32_0 : i32, i32, i32
  }
  func.func @transform_8(%arg0: i32, %arg1: i32) -> (i32, i32) {
    %c0_i32 = arith.constant 0 : i32
    %c0_i32_0 = arith.constant 0 : i32
    %c0_i32_1 = arith.constant 0 : i32
    return %c0_i32, %c0_i32_0 : i32, i32
  }
  func.func @transform_9(%arg0: i32, %arg1: i32) -> (i32, i32, i32) {
    %c0_i32 = arith.constant 0 : i32
    %c0_i32_0 = arith.constant 0 : i32
    %c0_i32_1 = arith.constant 0 : i32
    return %arg0, %c0_i32, %c0_i32_0 : i32, i32, i32
  }
}

</mosaic_0001>

<bundles_post_ra>
// kernel: tpu_custom_call.1
= control target key start
LH: loop header
LB: loop body
LE: loop exit
PB: predicated region body
PF: predicated region fallthrough
CT: control target
= control target key end

     0   :  { %s3677_s0 = inlined_call_operand.hbm [shape: bf16[32,128], index: 0, kind: input, shape index: {}]   ;;  %s3678_s1 = inlined_call_operand.hbm [shape: bf16[128,128], index: 1, kind: input, shape index: {}]   ;;  %s3679_s2 = inlined_call_operand.hbm [shape: f32[32,128], index: 2, kind: input, shape index: {}]   ;;  %s3680_s3 = inlined_call_operand.hbm [shape: f32[2,8,128], index: 3, kind: input, shape index: {}]   ;;  %s3681_s4 = inlined_call_operand.hbm [shape: bf16[2,128,128], index: 4, kind: input, shape index: {}]   ;;  %s3682_s5 = inlined_call_operand.hbm [shape: bf16[2,32,128], index: 5, kind: input, shape index: {}]   ;;  %s3683_s6 = inlined_call_operand.hbm [shape: bf16[2,128,128], index: 6, kind: input, shape index: {}]   ;;  %s3684_s7 = inlined_call_operand.hbm [shape: bf16[2,128,128], index: 7, kind: input, shape index: {}]   ;;  %s3685_s8 = inlined_call_operand.vmem [shape: f32[3,128], index: 8, kind: input, shape index: {}]   ;;  %s3686_s9 = inlined_call_operand.hbm [shape: f32[1,1,32], index: 9, kind: output, shape index: {}]  }
   0x1   :  { %3694 = sst [smem:[#allocation28_spill]] %s3677_s0 }
   0x2   :  { %3695 = sst [smem:[#allocation29_spill]] %s3678_s1 }
   0x3   :  { %3696 = sst [smem:[#allocation30_spill]] %s3679_s2 }
   0x4   :  { %3697 = sst [smem:[#allocation31_spill]] %s3680_s3 }
   0x5   :  { %3698 = sst [smem:[#allocation32_spill]] %s3685_s8 }
   0x6   :  { %3699 = sst [smem:[#allocation33_spill]] %s3686_s9 }
   0x7   :  { %14 = vsyncpa [#allocation4], 0 }
   0x8   :  { %15 = vsyncpa [#allocation7], 0 }
   0x9   :  { %16 = vsyncpa [#allocation10], 0 }
   0xa   :  { %18 = vsyncpa [#allocation10 + $0x1], 0 }
   0xb   :  { %19 = vsyncpa [#allocation13], 0 }
   0xc   :  { %21 = vsyncpa [#allocation13 + $0x1], 0 }
   0xd   :  { %22 = vsyncpa [#allocation16], 0 }
   0xe   :  { %24 = vsyncpa [#allocation16 + $0x1], 0 }
   0xf   :  { %25 = vsyncpa [#allocation5], 0  ;;  %s3086_s30 = smov 0   ;;  %s3088_s10 = smov 0  }
  0x10   :  { %s3090_s11 = smov 0   ;;  %s3092_s12 = smov 0  }
  0x11   :  { %s3094_s13 = smov 0   ;;  %s3096_s14 = smov 0  }
  0x12 LB: > { %3700 = sst [smem:[#allocation24_spill]] %s2999_s11  ;;  %s3115_s15 = sadd.s32 4294967295, %s3011_s14   ;;  %s3011_s14 = sphi %s3096_s14, %s31_s14   ;;  %s3007_s13 = sphi %s3094_s13, %s3728_s13   ;;  %s3003_s12 = sphi %s3092_s12, %s3727_s12   ;;  %s2999_s11 = sphi %s3090_s11, %s3723_s11   ;;  %s2995_s10 = sphi %s3088_s10, %s3726_s10   ;;  %s2991_s30 = sphi %s3086_s30, %s3725_s30  }
  0x13   : > { %3701 = sst [smem:[#allocation25_spill]] %s3011_s14  ;;  %p131_p0 = scmp.ne.s32.totalorder %s2995_s10, %s2991_s30 }
  0x14   : > { %p132_p1 = scmp.eq.s32.totalorder %s3115_s15, 0  ;;  %p2197_p2 = scmp.ge.s32.totalorder %s3011_s14, 1 }
  0x15   : > { %p293_p3 = scmp.lt.s32.totalorder %s3011_s14, 3  ;;  %s3704_s1 = sld [smem:[#allocation29_spill]] }
  0x16   : > { %p3123_p4 = por %p132_p1, %p131_p0  ;;  %s3013_s21 = smov [#allocation6]  }
  0x17   : > { %p3127_p5 = pnand %p2197_p2, %p293_p3  ;;  %s323_s22 = sshll.u32 %s3013_s21, 4  ;;  %s324_s22 = int_to_ptr.vmem [resolvable:$true] %s323_s22 }
  0x18   : > { %s3687_s24 = smov 64   ;;  %s3689_s25 = smov 4  }
  0x19   : > { %p2468_p6 = pneg %p3127_p5  ;;  %s40_s26 = sadd.s32 1, %s3007_s13 }
  0x1a   : > { %p41_p8 = scmp.ge.s32.totalorder %s40_s26, 2  ;;  %s118_s27 = sadd.s32 1, %s2999_s11 }
  0x1b   : > { %s321_s20 = sshll.u32 %s3704_s1, 4  ;;  %p3138_p7 = pnand %p2468_p6, %p132_p1  ;;  %s322_s20 = int_to_ptr.hbm [resolvable:$true] %s321_s20 }
  0x1c   : > { %p125_p9 = scmp.ne.s32.totalorder %s2999_s11, %s2995_s10  ;;  %p126_p10 = scmp.eq.s32.totalorder %s3011_s14, 0 }
  0x1d   : > { %2474 = dma.hbm_to_vmem [thread:$0]  (!%p3138_p7), %s322_s20, 1024, %s324_s22, [#allocation7], %s3687_s24, %s3687_s24, %s3689_s25  }
  0x1e   : > { %s3730_s26 = smov (%p41_p8, %s40_s26), 0  ;;  %p3154_p11 = por %p126_p10, %p125_p9 }
  0x1f   : > { %3706 = sst [smem:[#allocation26_spill]] %s3730_s26  ;;  %p2497_p12 = scmp.lt.s32.totalorder %s3011_s14, 2 }
  0x20   : > { %s115_s29 = ssub.s32 %s3007_s13, %s3730_s26  ;;  %s354_s30 = sand.u32 1, %s3011_s14  }
  0x21   : > { %p116_p13 = scmp.eq.s32.totalorder %s115_s29, 0  ;;  %s3163_s18 = sand.u32 1, %s2999_s11  }
  0x22   : > { %s2203_s19 = sshll.u32 %s3007_s13, 3  ;;  %s2202_s21 = sshll.u32 %s3163_s18, 3 }
  0x23   : > { %s3167_s20 = scalar_select %p116_p13, %s2999_s11, %s118_s27  }
  0x24   : > { %s3709_s3 = sld [smem:[#allocation31_spill]]  ;;  %s358_s9 = scalar_lea.vmem [#allocation9], %s2202_s21 }
  0x25   : > { %3708 = sst [smem:[#allocation27_spill]] %s3167_s20  ;;  %s366_s26 = sshll.u32 %s358_s9, 4  ;;  %s367_s26 = int_to_ptr.vmem [resolvable:$true] %s366_s26 }
  0x26   : > { %p3177_p0 = pnand %p2497_p12, %p3154_p11  ;;  %s3182_s27 = sshll.u32 %s3163_s18, 6 }
  0x27   : > { %s2207_s20 = sshll.u32 %s3163_s18, 4  ;;  %s3185_s11 = scalar_lea.sflag [#allocation10], %s354_s30 }
  0x28   : > { %s2395_s24 = sshll.u32 %s3007_s13, 4  ;;  %s3711_s14 = smov 4  }
  0x29   : > { %s404_s28 = scalar_lea.hbm %s3682_s5, %s2395_s24  ;;  %s3712_s8 = smov 64  }
  0x2a   : > { %s362_s25 = scalar_lea.hbm %s3709_s3, %s2203_s19  ;;  %s399_s19 = scalar_lea.vmem [#allocation12], %s2207_s20 }
  0x2b   : > { %s364_s1 = sshll.u32 %s362_s25, 4  ;;  %s407_s21 = sshll.u32 %s399_s19, 4  ;;  %s365_s1 = int_to_ptr.hbm [resolvable:$true] %s364_s1  ;;  %s408_s21 = int_to_ptr.vmem [resolvable:$true] %s407_s21 }
  0x2c   : > { %2481 = dma.hbm_to_vmem [thread:$0]  (!%p3177_p0), %s365_s1, 128, %s367_s26, %s3185_s11  }
  0x2d   : > { %s405_s22 = sshll.u32 %s404_s28, 4  ;;  %s3194_s3 = scalar_lea.sflag [#allocation13], %s354_s30  ;;  %s406_s22 = int_to_ptr.hbm [resolvable:$true] %s405_s22 }
  0x2e   : > { %2487 = dma.hbm_to_vmem [thread:$0]  (!%p3177_p0), %s406_s22, 256, %s408_s21, %s3194_s3, %s3712_s8, %s3712_s8, %s3711_s14  }
  0x2f   : > { %s3713_s0 = sld [smem:[#allocation28_spill]]  ;;  %s3016_s20 = smov [#allocation3]  }
  0x30   : > { %s309_s25 = sshll.u32 %s3016_s20, 4  ;;  %s3714_s2 = sld [smem:[#allocation30_spill]]  ;;  %s310_s25 = int_to_ptr.vmem [resolvable:$true] %s309_s25 }
  0x31   : > { %s3017_s19 = smov [#allocation8]   ;;  %s3018_s22 = smov 128  }
  0x32   : > { %s337_s21 = sshll.u32 %s3017_s19, 4  ;;  %s3019_s1 = smov 8   ;;  %s338_s21 = int_to_ptr.vmem [resolvable:$true] %s337_s21 }
  0x33   : > { %s2394_s26 = sshll.u32 %s3007_s13, 6  ;;  %s377_s20 = scalar_lea.vmem [#allocation11], %s3182_s27 }
  0x34   : > { %s385_s9 = sshll.u32 %s377_s20, 4  ;;  %s426_s23 = scalar_lea.hbm %s3683_s6, %s2394_s26  ;;  %s386_s9 = int_to_ptr.vmem [resolvable:$true] %s385_s9 }
  0x35   : > { %s307_s24 = sshll.u32 %s3713_s0, 4  ;;  %s443_s20 = scalar_lea.vmem [#allocation15], %s3182_s27  ;;  %s308_s24 = int_to_ptr.hbm [resolvable:$true] %s307_s24 }
  0x36   : > { %s335_s30 = sshll.u32 %s3714_s2, 4  ;;  %s382_s2 = scalar_lea.hbm %s3681_s4, %s2394_s26  ;;  %s336_s30 = int_to_ptr.hbm [resolvable:$true] %s335_s30 }
  0x37   : > { %2471 = dma.hbm_to_vmem [thread:$0]  (!%p3138_p7), %s308_s24, 256, %s310_s25, [#allocation4], %s3712_s8, %s3712_s8, %s3711_s14  }
  0x38   : > { %2477 = dma.hbm_to_vmem [thread:$0]  (!%p3138_p7), %s336_s30, 512, %s338_s21, [#allocation7], %s3018_s22, %s3018_s22, %s3019_s1  }
  0x39   : > { %s383_s24 = sshll.u32 %s382_s2, 4  ;;  %s427_s30 = sshll.u32 %s426_s23, 4  ;;  %s384_s24 = int_to_ptr.hbm [resolvable:$true] %s383_s24  ;;  %s428_s30 = int_to_ptr.hbm [resolvable:$true] %s427_s30 }
  0x3a   : > { %2484 = dma.hbm_to_vmem [thread:$0]  (!%p3177_p0), %s384_s24, 1024, %s386_s9, %s3185_s11, %s3712_s8, %s3712_s8, %s3711_s14  }
  0x3b   : > { %s421_s21 = scalar_lea.vmem [#allocation14], %s3182_s27  ;;  %s448_s1 = scalar_lea.hbm %s3684_s7, %s2394_s26 }
  0x3c   : > { %s429_s22 = sshll.u32 %s421_s21, 4  ;;  %s451_s28 = sshll.u32 %s443_s20, 4  ;;  %s430_s22 = int_to_ptr.vmem [resolvable:$true] %s429_s22  ;;  %s452_s28 = int_to_ptr.vmem [resolvable:$true] %s451_s28 }
  0x3d   : > { %2490 = dma.hbm_to_vmem [thread:$0]  (!%p3177_p0), %s428_s30, 1024, %s430_s22, %s3194_s3, %s3712_s8, %s3712_s8, %s3711_s14  }
  0x3e   : > { %s449_s25 = sshll.u32 %s448_s1, 4  ;;  %s440_s11 = scalar_lea.sflag [#allocation16], %s3163_s18  ;;  %s450_s25 = int_to_ptr.hbm [resolvable:$true] %s449_s25 }
  0x3f   : > { %2493 = dma.hbm_to_vmem [thread:$0]  (!%p3177_p0), %s450_s25, 1024, %s452_s28, %s440_s11, %s3712_s8, %s3712_s8, %s3711_s14  }
  0x40   : > { %463 = sbr.rel (%p3127_p5) target bundleno = 3452 (0xd7c), region = 56 }
  0x45   : > { %2966 = dma.done.wait (%p132_p1), [#allocation4], 256  }
  0x46   : > { %2968 = vsyncadd (%p132_p1), [#allocation4], 4294967040 }
  0x47   : > { %2970 = dma.done.wait (%p132_p1), [#allocation7], 1536  }
  0x48   : > { %2972 = vsyncadd (%p132_p1), [#allocation7], 4294965760  ;;  %s480_s3 = sand.u32 1, %s3115_s15   ;;  %s482_s8 = sand.u32 1, %s2995_s10  }
  0x49   : > { %s2220_s14 = sshll.u32 %s482_s8, 3  ;;  %s481_s17 = scalar_lea.sflag [#allocation10], %s480_s3 }
  0x4a   : > { %s3258_s18 = scalar_lea.vmem [#allocation9], %s2220_s14 }
  0x4b   : > { %2974 = dma.done.wait (%p3123_p4), %s481_s17, 1152  }
  0x4c   : > { %2976 = vsyncadd (%p3123_p4), %s481_s17, 4294966144  ;;  %s2221_s29 = sshll.u32 %s482_s8, 6  ;;  %s2222_s27 = sshll.u32 %s482_s8, 4 }
  0x4d   : > { %s3264_s26 = scalar_lea.vmem [#allocation11], %s2221_s29  ;;  %s501_s9 = scalar_lea.sflag [#allocation13], %s480_s3 }
  0x4e   : > { %s3266_s24 = scalar_lea.vmem [#allocation12], %s2222_s27 }
  0x4f   : > { %2978 = dma.done.wait (%p3123_p4), %s501_s9, 1280  }
  0x50   : > { %2980 = vsyncadd (%p3123_p4), %s501_s9, 4294966016  ;;  %s3272_s19 = scalar_lea.vmem [#allocation14], %s2221_s29  ;;  %s521_s23 = scalar_lea.sflag [#allocation16], %s482_s8 }
  0x51   : > { %s3274_s30 = scalar_lea.vmem [#allocation15], %s2221_s29 }
  0x52   : > { %2982 = dma.done.wait (%p3123_p4), %s521_s23, 1024  }
  0x53   : > { %2984 = vsyncadd (%p3123_p4), %s521_s23, 4294966272  ;;  %v577_v0 = vlaneseq  ;;  %v3020_v2 = vmov 0.0   ;;  %p2226_p1 = scmp.ne.s32.totalorder %s3003_s12, 0 }
  0x55   : > { %v3281_v1 = vand.u32 127, %v577_v0  ;;  %585 = sbr.rel (%p2226_p1) target bundleno = 260 (0x104), region = 92 }
  0x57   : > { %vm579_vm0 = vcmp.lt.s32.totalorder %v3281_v1, 32 }
  0x58   : > { %v3284_v3 = vsel %vm579_vm0, 1.0, %v3020_v2 }
  0x5a   : > { %v2407_v4 = vld [vmem:[#allocation6 + $0x38] sm:$0xff]  ;;  %v2406_v5 = vld [vmem:[#allocation6 + $0x30] sm:$0xff]  ;;  %v2405_v6 = vld [vmem:[#allocation6 + $0x28] sm:$0xff] }
  0x5b   : > { %670 = vmatpush.bf16.msra.mxu0 %v2407_v4  ;;  %2434 = vmatpush.bf16.msra.mxu1 %v2407_v4  ;;  %v2404_v7 = vld [vmem:[#allocation6 + $0x20] sm:$0xff]  ;;  %v2403_v8 = vld [vmem:[#allocation6 + $0x18] sm:$0xff]  ;;  %v2402_v9 = vld [vmem:[#allocation6 + $0x10] sm:$0xff] }
  0x5c   : > { %v2401_v10 = vld [vmem:[#allocation6 + $0x8] sm:$0xff]  ;;  %v2400_v11 = vld [vmem:[#allocation6] sm:$0xff]  ;;  %v2398_v12 = vld [vmem:[#allocation3] sm:$0xff] }
  0x5d   : > { %v2399_v13 = vld [vmem:[#allocation3 + $0x8] sm:$0xff]  ;;  %v606_v14 = vld [vmem:[#allocation8] sm:$0xff]  ;;  %v608_v15 = vld [vmem:[#allocation8 + $0x10] sm:$0xff] }
  0x5e   : > { %v607_v20 = vld [vmem:[#allocation8 + $0x8] sm:$0xff]  ;;  %v609_v21 = vld [vmem:[#allocation8 + $0x18] sm:$0xff] }
  0x5f   : > { %671 = vmatpush.bf16.msra.mxu0 %v2406_v5  ;;  %2435 = vmatpush.bf16.msra.mxu1 %v2406_v5 }
  0x63   : > { %672 = vmatpush.bf16.msra.mxu0 %v2405_v6  ;;  %2436 = vmatpush.bf16.msra.mxu1 %v2405_v6 }
  0x67   : > { %673 = vmatpush.bf16.msra.mxu0 %v2404_v7  ;;  %2437 = vmatpush.bf16.msra.mxu1 %v2404_v7 }
  0x6b   : > { %674 = vmatpush.bf16.msra.mxu0 %v2403_v8  ;;  %2438 = vmatpush.bf16.msra.mxu1 %v2403_v8 }
  0x6f   : > { %675 = vmatpush.bf16.msra.mxu0 %v2402_v9  ;;  %2439 = vmatpush.bf16.msra.mxu1 %v2402_v9 }
  0x73   : > { %676 = vmatpush.bf16.msra.mxu0 %v2401_v10  ;;  %2440 = vmatpush.bf16.msra.mxu1 %v2401_v10 }
  0x77   : > { %677 = vmatpush.bf16.msra.mxu0 %v2400_v11  ;;  %2441 = vmatpush.bf16.msra.mxu1 %v2400_v11 }
  0x7a   : > { %678 = vmatmul.bf16.vlgmr.msra.gmra.mxu0 %v2398_v12  ;;  %683 = vmatmul.bf16.vlgmr.msra.gmra.mxu1 %v2399_v13 }
  0xf7   : > { %v679_v16 = vpop.f32.mrf.mxu0  ;;  %v684_v17 = vpop.f32.mrf.mxu1 }
  0xf8   : > { %v680_v18 = vadd.f32 %v679_v16, %v606_v14  ;;  %v685_v19 = vadd.f32 %v684_v17, %v608_v15 }
  0xfa   : > { %689 = vst [vmem:[#allocation2 + $0x10] sm:$0xff] %v680_v18 }
  0xfb   : > { %691 = vst [vmem:[#allocation2 + $0x18] sm:$0xff] %v685_v19 }
  0xff   : > { %v681_v22 = vpop.f32.mrf.mxu0  ;;  %v686_v23 = vpop.f32.mrf.mxu1 }
 0x100   : > { %v682_v24 = vadd.f32 %v681_v22, %v607_v20  ;;  %v687_v25 = vadd.f32 %v686_v23, %v609_v21 }
 0x102   : > { %690 = vst [vmem:[#allocation2] sm:$0xff] %v682_v24 }
 0x103   : > { %692 = vst [vmem:[#allocation2 + $0x8] sm:$0xff] %v687_v25 }
 0x104 PF: > { %v693_v26 = vld [vmem:[#allocation2 + $0x10] sm:$0xff]  ;;  %v2415_v38 = vld [vmem:[%s3264_s26 + $0x38] sm:$0xff]  ;;  %v2413_v40 = vld [vmem:[%s3264_s26 + $0x28] sm:$0xff]  ;;  %s3021_s16 = smov 64   ;;  %s3022_s21 = smov 96   ;;  %vm887_vm7 = vcmask 64512  }
 0x105   : > { %698 = vadd.xlane.f32.xlu0 %v693_v26  ;;  %859 = vmatpush.bf16.msra.mxu0 %v2415_v38  ;;  %v2414_v39 = vld [vmem:[%s3264_s26 + $0x30] sm:$0xff]  ;;  %v2412_v41 = vld [vmem:[%s3264_s26 + $0x20] sm:$0xff]  ;;  %v2411_v42 = vld [vmem:[%s3264_s26 + $0x18] sm:$0xff]  ;;  %s3023_s22 = smov 120   ;;  %s3024_s0 = smov 80   ;;  %vm910_vm9 = vcmask 130048  }
 0x106   : > { %v2410_v43 = vld [vmem:[%s3264_s26 + $0x10] sm:$0xff]  ;;  %v2409_v44 = vld [vmem:[%s3264_s26 + $0x8] sm:$0xff]  ;;  %v2408_v46 = vld [vmem:[%s3264_s26] sm:$0xff]  ;;  %s3025_s2 = smov 104   ;;  %s3026_s1 = smov 88  }
 0x107   : > { %v697_v62 = vld [vmem:[%s3258_s18] sm:$0xff]  ;;  %s3027_s20 = smov 72   ;;  %s3028_s28 = smov 112  }
 0x108   : > { %v3298_v5 = vperm.slane %v697_v62, 0  ;;  %v3301_v10 = vperm.slane %v697_v62, 1  ;;  %v3306_v16 = vperm.slane %v697_v62, 2  ;;  %v3350_v38 = vld [vmem:[#allocation2 + $0x18] sm:$0xff]  ;;  %s3029_s25 = smov 56   ;;  %s3030_s11 = smov 48  }
 0x109   : > { %v694_v27 = vld [vmem:[#allocation2] sm:$0xff]  ;;  %860 = vmatpush.bf16.msra.mxu0 %v2414_v39  ;;  %s3031_s3 = smov 40   ;;  %s3032_s8 = smov 16  }
 0x10a   : > { %v3318_v21 = vld [vmem:[#allocation2 + $0x8] sm:$0xff]  ;;  %s3033_s14 = smov 8   ;;  %s3034_s17 = smov 24  }
 0x10b   : > { %p2389_p2 = scmp.ne.s32.totalorder %s3003_s12, 1 }
 0x10c   : > { %s3719_s29 = sld [smem:[#allocation32_spill]] (!%p2389_p2) }
 0x10d   : > { %700 = vadd.xlane.f32.xlu0 %v694_v27  ;;  %861 = vmatpush.bf16.msra.mxu0 %v2413_v40 }
 0x111   : > { %862 = vmatpush.bf16.msra.mxu0 %v2412_v41 }
 0x115   : > { %863 = vmatpush.bf16.msra.mxu0 %v2411_v42 }
 0x119   : > { %864 = vmatpush.bf16.msra.mxu0 %v2410_v43 }
 0x11d   : > { %865 = vmatpush.bf16.msra.mxu0 %v2409_v44 }
 0x121   : > { %866 = vmatpush.bf16.msra.mxu0 %v2408_v46 }
 0x178   : > { %v699_v28 = vpop.xlane.xlu0 %698 }
 0x179   : > { %v706_v29 = vmul.f32 0.03125, %v699_v28 }
 0x17b   : > { %v710_v30 = vsub.f32 %v693_v26, %v706_v29  ;;  %v879_v29 = vshrl.u32 %v577_v0, 7 }
 0x17d   : > { %v714_v31 = vmul.f32 %v3284_v3, %v710_v30  ;;  %vm3333_vm8 = vcmp.ge.s32.totalorder %v879_v29, %v3281_v1 }
 0x17f   : > { %v718_v32 = vmul.f32 %v714_v31, %v714_v31 }
 0x180   : > { %v701_v33 = vpop.xlane.xlu0 %700 }
 0x181   : > { %v707_v34 = vmul.f32 0.03125, %v701_v33  ;;  %722 = vadd.xlane.f32.xlu1 %v718_v32 }
 0x183   : > { %v711_v35 = vsub.f32 %v694_v27, %v707_v34  ;;  %v880_v34 = vadd.s32 8, %v879_v29 }
 0x185   : > { %v715_v36 = vmul.f32 %v3284_v3, %v711_v35  ;;  %vm3341_vm10 = vcmp.ge.s32.totalorder %v880_v34, %v3281_v1 }
 0x187   : > { %v719_v37 = vmul.f32 %v715_v36, %v715_v36 }
 0x189   : > { %724 = vadd.xlane.f32.xlu1 %v719_v37 }
 0x1f4   : > { %v723_v45 = vpop.xlane.xlu1 %722 }
 0x1f5   : > { %v730_v47 = vmul.f32 0.03125, %v723_v45 }
 0x1f7   : > { %v734_v48 = vadd.f32 1e-05, %v730_v47 }
 0x1f9   : > { %2574 = vrsqrt.f32 %v734_v48  ;;  %vm744_vm2 = vweird.f32 %v734_v48 }
 0x1fc   : > { %v725_v49 = vpop.xlane.xlu1 %724 }
 0x1fd   : > { %v731_v50 = vmul.f32 0.03125, %v725_v49 }
 0x1ff   : > { %v2575_v51 = vpop.eup %2574  ;;  %v735_v52 = vadd.f32 1e-05, %v731_v50 }
 0x200   : > { %v739_v53 = vmul.f32 %v2575_v51, %v734_v48  ;;  %vm745_vm1 = vweird.f32 %v2575_v51 }
 0x201   : > { %2576 = vrsqrt.f32 %v735_v52  ;;  %vm746_vm3 = vmor %vm744_vm2, %vm745_vm1  ;;  %vm754_vm5 = vweird.f32 %v735_v52  ;;  %vm1200_vm1 = vcmask 195584   ;;  %vm1536_vm2 = vcmask 261120  }
 0x202   : > { %v740_v54 = vmul.f32 %v2575_v51, %v739_v53 }
 0x204   : > { %v741_v55 = vmul.f32 0.5, %v740_v54 }
 0x206   : > { %v742_v56 = vsub.f32 1.5, %v741_v55 }
 0x207   : > { %v2577_v57 = vpop.eup %2576 }
 0x208   : > { %v743_v58 = vmul.f32 %v2575_v51, %v742_v56  ;;  %v749_v59 = vmul.f32 %v2577_v57, %v735_v52  ;;  %vm755_vm4 = vweird.f32 %v2577_v57 }
 0x209   : > { %vm756_vm6 = vmor %vm754_vm5, %vm755_vm4 }
 0x20a   : > { %v750_v60 = vmul.f32 %v2577_v57, %v749_v59  ;;  %v747_v63 = vsel %vm746_vm3, %v2575_v51, %v743_v58 }
 0x20b   : > { %v778_v4 = vmul.f32 %v747_v63, %v714_v31 }
 0x20c   : > { %v751_v61 = vmul.f32 0.5, %v750_v60 }
 0x20d   : > { %v783_v9 = vmul.f32 %v3298_v5, %v778_v4 }
 0x20e   : > { %v752_v2 = vsub.f32 1.5, %v751_v61 }
 0x20f   : > { %v788_v12 = vadd.f32 %v3301_v10, %v783_v9 }
 0x210   : > { %v753_v6 = vmul.f32 %v2577_v57, %v752_v2 }
 0x212   : > { %v757_v7 = vsel %vm756_vm6, %v2577_v57, %v753_v6 }
 0x213   : > { %v779_v8 = vmul.f32 %v757_v7, %v715_v36 }
 0x215   : > { %v784_v11 = vmul.f32 %v3298_v5, %v779_v8 }
 0x217   : > { %v789_v13 = vadd.f32 %v3301_v10, %v784_v11 }
 0x219   : > { %v792_v14 = vpack.c.bf16 %v789_v13, %v788_v12 }
 0x21b   : > { %867 = vmatmul.bf16.vlgmr.msra.gmra.mxu0 %v792_v14 }
 0x298   : > { %v868_v15 = vpop.f32.mrf.mxu0 }
 0x299   : > { %v869_v18 = vadd.f32 %v868_v15, %v3306_v16 }
 0x2a0   : > { %v870_v17 = vpop.f32.mrf.mxu0 }
 0x2a1   : > { %v871_v19 = vadd.f32 %v870_v17, %v3306_v16 }
 0x2a3   : > { %v3310_v20 = vpack.c.bf16 %v871_v19, %v869_v18 }
 0x2a5   : > { %930 = vrot.lane.b32.xlu1 %v3310_v20, %s3021_s16  ;;  %885 = vrot.lane.b32.xlu2 %v3310_v20, %s3022_s21 }
 0x2ad   : > { %956 = vrot.lane.b32.xlu1 %v3310_v20, %s3023_s22 }
 0x2d7   : > { %704 = vadd.xlane.f32.xlu1 %v3318_v21 }
 0x2f0   : > { %1029 = vrot.lane.b32.xlu1 %v3310_v20, %s3024_s0 }
 0x2f8   : > { %1098 = vrot.lane.b32.xlu1 %v3310_v20, %s3025_s2 }
 0x2ff   : > { %v886_v22 = vpop.permute.xlu2 %885 }
 0x300   : > { %v892_v23 = vsel %vm887_vm7, %v886_v22, 0 }
 0x301   : > { %901 = vmatpush.bf16.xpose.msra.mxu3 %v892_v23 }
 0x308   : > { %2299 = vmatmul.msk.bf16.vlgmr.msra.gmra.mxu3 %vm887_vm7, %v3310_v20 }
 0x317   : > { %v931_v24 = vpop.permute.xlu1 %930 }
 0x318   : > { %943 = vmatpush.bf16.msrb.mxu3 %v931_v24 }
 0x31f   : > { %v957_v25 = vpop.permute.xlu1 %956 }
 0x34a   : > { %v3328_v26 = vpop.xlane.xlu1 %704 }
 0x34b   : > { %v709_v4 = vmul.f32 0.03125, %v3328_v26 }
 0x34d   : > { %v713_v6 = vsub.f32 %v3318_v21, %v709_v4 }
 0x34f   : > { %v3388_v7 = vmul.f32 %v3284_v3, %v713_v6 }
 0x351   : > { %v721_v8 = vmul.f32 %v3388_v7, %v3388_v7 }
 0x362   : > { %v1030_v27 = vpop.permute.xlu1 %1029 }
 0x363   : > { %v1035_v28 = vsel %vm887_vm7, %v1030_v27, 0 }
 0x364   : > { %1044 = vmatpush.bf16.xpose.msra.mxu1 %v1035_v28 }
 0x36a   : > { %v1099_v24 = vpop.permute.xlu1 %1098 }
 0x38b   : > { %v903_v31 = vpop.f32.mrf.mxu3 }
 0x38c   : > { %v908_v32 = vsel %vm3333_vm8, %v903_v31, -1e+30 }
 0x38d   : > { %v911_v33 = vsel %vm910_vm9, %v908_v32, -inf }
 0x38e   : > { %912 = vmax.xlane.f32.xlu2 %v911_v33 }
 0x393   : > { %v905_v0 = vpop.f32.mrf.mxu3 }
 0x394   : > { %v909_v36 = vsel %vm3341_vm10, %v905_v0, -1e+30 }
 0x395   : > { %v914_v37 = vsel %vm910_vm9, %v909_v36, -inf }
 0x396   : > { %915 = vmax.xlane.f32.xlu0 %v914_v37 }
 0x3aa   : > { %958 = vrot.lane.b32.xlu0 %v3310_v20, %s3026_s1 }
 0x3d4   : > { %702 = vadd.xlane.f32.xlu0 %v3350_v38 }
 0x401   : > { %v913_v39 = vpop.xlane.xlu2 %912 }
 0x402   : > { %v917_v1 = vsub.f32 %v908_v32, %v913_v39 }
 0x404   : > { %v919_v40 = vmul.f32 1.442695, %v917_v1 }
 0x406   : > { %2578 = vpow2.f32 %v919_v40 }
 0x409   : > { %v916_v41 = vpop.xlane.xlu0 %915 }
 0x40a   : > { %v918_v42 = vsub.f32 %v909_v36, %v916_v41 }
 0x40c   : > { %v921_v43 = vmul.f32 1.442695, %v918_v42  ;;  %v3353_v44 = vpop.eup %2578 }
 0x40e   : > { %2580 = vpow2.f32 %v921_v43 }
 0x414   : > { %v3355_v45 = vpop.eup %2580 }
 0x415   : > { %v929_v46 = vpack.c.bf16 %v3355_v45, %v3353_v44 }
 0x417   : > { %2300 = vmatmul.msk.bf16.vlgmr.msrb.gmra.mxu3 %vm910_vm9, %v929_v46 }
 0x41c   : > { %v959_v47 = vpop.permute.xlu0 %958 }
 0x41d   : > { %v964_v48 = vsel %vm887_vm7, %v959_v47, 0 }
 0x41e   : > { %973 = vmatpush.bf16.xpose.msra.mxu3 %v964_v48 }
 0x427   : > { %2301 = vmatmul.msk.bf16.vlgmr.msra.gmra.mxu3 %vm887_vm7, %v957_v25 }
 0x447   : > { %v703_v49 = vpop.xlane.xlu0 %702 }
 0x448   : > { %v708_v50 = vmul.f32 0.03125, %v703_v49 }
 0x44a   : > { %v712_v51 = vsub.f32 %v3350_v38, %v708_v50 }
 0x44c   : > { %v3364_v52 = vmul.f32 %v3284_v3, %v712_v51 }
 0x44e   : > { %v720_v53 = vmul.f32 %v3364_v52, %v3364_v52 }
 0x450   : > { %726 = vadd.xlane.f32.xlu0 %v720_v53 }
 0x464   : > { %1100 = vrot.lane.b32.xlu0 %v3310_v20, %s3027_s20 }
 0x46c   : > { %1027 = vrot.lane.b32.xlu0 %v3310_v20, %s3028_s28 }
 0x49a   : > { %v3372_v54 = vpop.f32.mrf.mxu3 }
 0x4a2   : > { %v3374_v55 = vpop.f32.mrf.mxu3 }
 0x4aa   : > { %v975_v56 = vpop.f32.mrf.mxu3 }
 0x4ab   : > { %v980_v57 = vsel %vm3333_vm8, %v975_v56, -1e+30 }
 0x4ac   : > { %v982_v58 = vsel %vm910_vm9, %v980_v57, -inf }
 0x4ad   : > { %983 = vmax.xlane.f32.xlu2 %v982_v58 }
 0x4b2   : > { %v977_v59 = vpop.f32.mrf.mxu3 }
 0x4b3   : > { %v981_v60 = vsel %vm3341_vm10, %v977_v59, -1e+30 }
 0x4b4   : > { %v985_v61 = vsel %vm910_vm9, %v981_v60, -inf }
 0x4b5   : > { %986 = vmax.xlane.f32.xlu2 %v985_v61 }
 0x4c3   : > { %v727_v62 = vpop.xlane.xlu0 %726 }
 0x4c4   : > { %v732_v25 = vmul.f32 0.03125, %v727_v62 }
 0x4c6   : > { %v736_v26 = vadd.f32 1e-05, %v732_v25 }
 0x4c8   : > { %vm764_vm11 = vweird.f32 %v736_v26 }
 0x4cd   : > { %1001 = vrot.lane.b32.xlu2 %v3310_v20, %s3029_s25 }
 0x4d6   : > { %v1101_v63 = vpop.permute.xlu0 %1100 }
 0x4d7   : > { %v1106_v18 = vsel %vm887_vm7, %v1101_v63, 0 }
 0x4de   : > { %v1028_v2 = vpop.permute.xlu0 %1027 }
 0x4df   : > { %2303 = vmatmul.msk.bf16.vlgmr.msra.gmra.mxu1 %vm887_vm7, %v1028_v2 }
 0x4f6   : > { %728 = vadd.xlane.f32.xlu2 %v721_v8 }
 0x50e   : > { %1072 = vrot.lane.b32.xlu2 %v3310_v20, %s3030_s11 }
 0x520   : > { %v984_v9 = vpop.xlane.xlu2 %983 }
 0x521   : > { %v988_v11 = vsub.f32 %v980_v57, %v984_v9 }
 0x523   : > { %v990_v12 = vmul.f32 1.442695, %v988_v11 }
 0x525   : > { %2582 = vpow2.f32 %v990_v12 }
 0x528   : > { %v987_v13 = vpop.xlane.xlu2 %986 }
 0x529   : > { %v989_v14 = vsub.f32 %v981_v60, %v987_v13 }
 0x52b   : > { %v992_v15 = vmul.f32 1.442695, %v989_v14  ;;  %v3395_v19 = vpop.eup %2582 }
 0x52d   : > { %2584 = vpow2.f32 %v992_v15 }
 0x52e   : > { %2586 = vrsqrt.f32 %v736_v26 }
 0x530   : > { %v1002_v17 = vpop.permute.xlu2 %1001 }
 0x531   : > { %1014 = vmatpush.bf16.msra.mxu2 %v1002_v17 }
 0x533   : > { %v3397_v22 = vpop.eup %2584 }
 0x534   : > { %v1000_v23 = vpack.c.bf16 %v3397_v22, %v3395_v19  ;;  %v2587_v31 = vpop.eup %2586 }
 0x535   : > { %1115 = vmatpush.bf16.xpose.msrb.mxu2 %v1106_v18  ;;  %v759_v33 = vmul.f32 %v2587_v31, %v736_v26  ;;  %vm765_vm12 = vweird.f32 %v2587_v31 }
 0x536   : > { %2302 = vmatmul.msk.bf16.vlgmr.msra.gmra.mxu2 %vm910_vm9, %v1000_v23  ;;  %vm766_vm13 = vmor %vm764_vm11, %vm765_vm12 }
 0x537   : > { %v760_v36 = vmul.f32 %v2587_v31, %v759_v33 }
 0x539   : > { %v761_v40 = vmul.f32 0.5, %v760_v36 }
 0x53b   : > { %v762_v41 = vsub.f32 1.5, %v761_v40 }
 0x53d   : > { %v763_v46 = vmul.f32 %v2587_v31, %v762_v41 }
 0x53f   : > { %v767_v50 = vsel %vm766_vm13, %v2587_v31, %v763_v46 }
 0x540   : > { %v780_v53 = vmul.f32 %v767_v50, %v3364_v52 }
 0x542   : > { %v785_v59 = vmul.f32 %v3298_v5, %v780_v53 }
 0x544   : > { %v790_v60 = vadd.f32 %v3301_v10, %v785_v59 }
 0x546   : > { %2305 = vmatmul.msk.bf16.vlgmr.msrb.gmra.mxu2 %vm887_vm7, %v1099_v24 }
 0x55c   : > { %v1046_v27 = vpop.f32.mrf.mxu1 }
 0x55d   : > { %v1051_v28 = vsel %vm3333_vm8, %v1046_v27, -1e+30 }
 0x55e   : > { %v1053_v29 = vsel %vm910_vm9, %v1051_v28, -inf }
 0x55f   : > { %1054 = vmax.xlane.f32.xlu0 %v1053_v29 }
 0x564   : > { %v1048_v32 = vpop.f32.mrf.mxu1 }
 0x565   : > { %v1052_v34 = vsel %vm3341_vm10, %v1048_v32, -1e+30 }
 0x566   : > { %v1056_v0 = vsel %vm910_vm9, %v1052_v34, -inf }
 0x567   : > { %1057 = vmax.xlane.f32.xlu1 %v1056_v0 }
 0x569   : > { %v729_v37 = vpop.xlane.xlu2 %728 }
 0x56a   : > { %v733_v39 = vmul.f32 0.03125, %v729_v37 }
 0x56c   : > { %v737_v1 = vadd.f32 1e-05, %v733_v39 }
 0x56e   : > { %2588 = vrsqrt.f32 %v737_v1  ;;  %vm774_vm15 = vweird.f32 %v737_v1 }
 0x571   : > { %v1073_v42 = vpop.permute.xlu2 %1072 }
 0x572   : > { %1085 = vmatpush.bf16.msrb.mxu3 %v1073_v42 }
 0x573   : > { %1143 = vrot.lane.b32.xlu0 %v3310_v20, %s3031_s3 }
 0x574   : > { %v2589_v43 = vpop.eup %2588 }
 0x575   : > { %v769_v47 = vmul.f32 %v2589_v43, %v737_v1  ;;  %vm775_vm14 = vweird.f32 %v2589_v43 }
 0x576   : > { %vm776_vm0 = vmor %vm774_vm15, %vm775_vm14 }
 0x577   : > { %v770_v48 = vmul.f32 %v2589_v43, %v769_v47 }
 0x579   : > { %v771_v49 = vmul.f32 0.5, %v770_v48 }
 0x57b   : > { %v772_v51 = vsub.f32 1.5, %v771_v49 }
 0x57d   : > { %v773_v56 = vmul.f32 %v2589_v43, %v772_v51 }
 0x57f   : > { %v777_v57 = vsel %vm776_vm0, %v2589_v43, %v773_v56 }
 0x580   : > { %v781_v58 = vmul.f32 %v777_v57, %v3388_v7 }
 0x582   : > { %v786_v20 = vmul.f32 %v3298_v5, %v781_v58 }
 0x584   : > { %v791_v61 = vadd.f32 %v3301_v10, %v786_v20 }
 0x586   : > { %v793_v62 = vpack.c.bf16 %v791_v61, %v790_v60 }
 0x588   : > { %872 = vmatmul.bf16.gmra.mxu0 %v793_v62 }
 0x5d2   : > { %v1055_v63 = vpop.xlane.xlu0 %1054 }
 0x5d3   : > { %v1059_v2 = vsub.f32 %v1051_v28, %v1055_v63 }
 0x5d5   : > { %v1061_v4 = vmul.f32 1.442695, %v1059_v2 }
 0x5d7   : > { %2590 = vpow2.f32 %v1061_v4 }
 0x5da   : > { %v1058_v52 = vpop.xlane.xlu1 %1057 }
 0x5db   : > { %v1060_v6 = vsub.f32 %v1052_v34, %v1058_v52 }
 0x5dd   : > { %v1063_v8 = vmul.f32 1.442695, %v1060_v6  ;;  %v3417_v9 = vpop.eup %2590 }
 0x5df   : > { %2592 = vpow2.f32 %v1063_v8 }
 0x5e5   : > { %v3419_v7 = vpop.eup %2592  ;;  %v1144_v11 = vpop.permute.xlu0 %1143 }
 0x5e6   : > { %v1071_v5 = vpack.c.bf16 %v3419_v7, %v3417_v9  ;;  %1156 = vmatpush.bf16.msrb.mxu1 %v1144_v11 }
 0x5e8   : > { %2304 = vmatmul.msk.bf16.vlgmr.msrb.gmra.mxu3 %vm910_vm9, %v1071_v5 }
 0x605   : > { %v873_v10 = vpop.f32.mrf.mxu0 }
 0x606   : > { %v874_v13 = vadd.f32 %v873_v10, %v3306_v16 }
 0x60d   : > { %v875_v12 = vpop.f32.mrf.mxu0 }
 0x60e   : > { %v876_v14 = vadd.f32 %v875_v12, %v3306_v16  ;;  %v3440_v16 = vpop.f32.mrf.mxu2 }
 0x610   : > { %v3426_v15 = vpack.c.bf16 %v876_v14, %v874_v13 }
 0x612   : > { %1276 = vrot.lane.b32.xlu2 %v3426_v15, %s3026_s1  ;;  %1347 = vrot.lane.b32.xlu0 %v3426_v15, %s3024_s0 }
 0x613   : > { %1205 = vrot.lane.b32.xlu1 %v3426_v15, %s3022_s21 }
 0x616   : > { %v3442_v17 = vpop.f32.mrf.mxu2 }
 0x61a   : > { %1274 = vrot.lane.b32.xlu2 %v3426_v15, %s3023_s22  ;;  %1416 = vrot.lane.b32.xlu0 %v3426_v15, %s3025_s2 }
 0x61b   : > { %1345 = vrot.lane.b32.xlu1 %v3426_v15, %s3028_s28 }
 0x61e   : > { %v1117_v18 = vpop.f32.mrf.mxu2 }
 0x61f   : > { %v1122_v23 = vsel %vm3333_vm8, %v1117_v18, -1e+30  ;;  %v994_v18 = vsel %vm910_vm9, %v3395_v19, 0.0 }
 0x620   : > { %v1124_v24 = vsel %vm910_vm9, %v1122_v23, -inf }
 0x626   : > { %v1119_v25 = vpop.f32.mrf.mxu2 }
 0x627   : > { %v1123_v26 = vsel %vm3341_vm10, %v1119_v25, -1e+30 }
 0x628   : > { %v1127_v27 = vsel %vm910_vm9, %v1123_v26, -inf }
 0x643   : > { %1125 = vmax.xlane.f32.xlu2 %v1124_v24 }
 0x64b   : > { %1128 = vmax.xlane.f32.xlu2 %v1127_v27 }
 0x663   : > { %1418 = vrot.lane.b32.xlu2 %v3426_v15, %s3027_s20 }
 0x66b   : > { %v3465_v51 = vpop.f32.mrf.mxu3 }
 0x66c   : > { %v1277_v28 = vpop.permute.xlu2 %1276 }
 0x66d   : > { %v1282_v29 = vsel %vm887_vm7, %v1277_v28, 0 }
 0x66e   : > { %1291 = vmatpush.bf16.xpose.msra.mxu1 %v1282_v29 }
 0x673   : > { %v3467_v53 = vpop.f32.mrf.mxu3 }
 0x674   : > { %v1275_v36 = vpop.permute.xlu2 %1274 }
 0x684   : > { %v1348_v31 = vpop.permute.xlu0 %1347 }
 0x685   : > { %v1206_v32 = vpop.permute.xlu1 %1205  ;;  %v1353_v33 = vsel %vm887_vm7, %v1348_v31, 0 }
 0x686   : > { %v1211_v34 = vsel %vm887_vm7, %v1206_v32, 0  ;;  %1362 = vmatpush.bf16.xpose.msrb.mxu0 %v1353_v33 }
 0x687   : > { %1220 = vmatpush.bf16.xpose.msra.mxu3 %v1211_v34 }
 0x68c   : > { %v1417_v50 = vpop.permute.xlu0 %1416 }
 0x68d   : > { %v1346_v0 = vpop.permute.xlu1 %1345 }
 0x68e   : > { %2307 = vmatmul.msk.bf16.vlgmr.msra.gmra.mxu3 %vm887_vm7, %v3426_v15  ;;  %2311 = vmatmul.msk.bf16.vlgmr.msrb.gmra.mxu0 %vm887_vm7, %v1346_v0 }
 0x6b6   : > { %v1126_v37 = vpop.xlane.xlu2 %1125 }
 0x6b7   : > { %v1130_v39 = vsub.f32 %v1122_v23, %v1126_v37 }
 0x6b9   : > { %v1132_v1 = vmul.f32 1.442695, %v1130_v39 }
 0x6bb   : > { %2594 = vpow2.f32 %v1132_v1 }
 0x6be   : > { %v1129_v40 = vpop.xlane.xlu2 %1128 }
 0x6bf   : > { %v1131_v41 = vsub.f32 %v1123_v26, %v1129_v40  ;;  %v1065_v40 = vsel %vm910_vm9, %v3417_v9, 0.0 }
 0x6c1   : > { %v1134_v42 = vmul.f32 1.442695, %v1131_v41  ;;  %v2595_v43 = vpop.eup %2594 }
 0x6c2   : > { %v1136_v26 = vsel %vm910_vm9, %v2595_v43, 0.0 }
 0x6c3   : > { %2596 = vpow2.f32 %v1134_v42 }
 0x6c6   : > { %v1419_v47 = vpop.permute.xlu2 %1418 }
 0x6c7   : > { %v1424_v49 = vsel %vm887_vm7, %v1419_v47, 0 }
 0x6c9   : > { %v3458_v46 = vpop.eup %2596 }
 0x6ca   : > { %v1142_v48 = vpack.c.bf16 %v3458_v46, %v2595_v43 }
 0x6cc   : > { %2306 = vmatmul.msk.bf16.vlgmr.msrb.gmra.mxu1 %vm910_vm9, %v1142_v48 }
 0x6cd   : > { %1433 = vmatpush.bf16.xpose.msrb.mxu1 %v1424_v49  ;;  %v1068_v49 = vsel %vm910_vm9, %v3419_v7, 0.0  ;;  %v926_v7 = vsel %vm910_vm9, %v3355_v45, 0.0 }
 0x6dc   : > { %2309 = vmatmul.msk.bf16.vlgmr.msra.gmra.mxu1 %vm887_vm7, %v1275_v36 }
 0x6ec   : > { %2313 = vmatmul.msk.bf16.vlgmr.msrb.gmra.mxu1 %vm887_vm7, %v1417_v50  ;;  %v997_v50 = vsel %vm910_vm9, %v3397_v22, 0.0  ;;  %v923_v22 = vsel %vm910_vm9, %v3353_v44, 0.0 }
 0x70b   : > { %v1364_v58 = vpop.f32.mrf.mxu0 }
 0x70c   : > { %v1369_v20 = vsel %vm3333_vm8, %v1364_v58, -1e+30 }
 0x70d   : > { %v1371_v63 = vsel %vm910_vm9, %v1369_v20, -inf }
 0x711   : > { %v1222_v56 = vpop.f32.mrf.mxu3 }
 0x712   : > { %v1227_v57 = vsel %vm3333_vm8, %v1222_v56, -1e+30 }
 0x713   : > { %v1229_v59 = vsel %vm910_vm9, %v1227_v57, -inf  ;;  %v1366_v2 = vpop.f32.mrf.mxu0 }
 0x714   : > { %1230 = vmax.xlane.f32.xlu2 %v1229_v59  ;;  %v1370_v4 = vsel %vm3341_vm10, %v1366_v2, -1e+30 }
 0x715   : > { %v1374_v52 = vsel %vm910_vm9, %v1370_v4, -inf }
 0x719   : > { %v1224_v60 = vpop.f32.mrf.mxu3 }
 0x71a   : > { %v1228_v61 = vsel %vm3341_vm10, %v1224_v60, -1e+30 }
 0x71b   : > { %v1232_v62 = vsel %vm910_vm9, %v1228_v61, -inf }
 0x71c   : > { %1233 = vmax.xlane.f32.xlu1 %v1232_v62  ;;  %1372 = vmax.xlane.f32.xlu2 %v1371_v63 }
 0x724   : > { %1375 = vmax.xlane.f32.xlu2 %v1374_v52 }
 0x735   : > { %1248 = vrot.lane.b32.xlu1 %v3426_v15, %s3021_s16 }
 0x73d   : > { %1390 = vrot.lane.b32.xlu1 %v3426_v15, %s3030_s11 }
 0x749   : > { %v3485_v6 = vpop.f32.mrf.mxu1 }
 0x751   : > { %v3487_v8 = vpop.f32.mrf.mxu1 }
 0x759   : > { %v1293_v11 = vpop.f32.mrf.mxu1 }
 0x75a   : > { %v3491_v5 = vsel %vm3333_vm8, %v1293_v11, -1e+30 }
 0x75b   : > { %v1300_v10 = vsel %vm910_vm9, %v3491_v5, -inf }
 0x75c   : > { %1301 = vmax.xlane.f32.xlu0 %v1300_v10 }
 0x761   : > { %v1295_v12 = vpop.f32.mrf.mxu1 }
 0x762   : > { %v3497_v13 = vsel %vm3341_vm10, %v1295_v12, -1e+30 }
 0x763   : > { %v1303_v14 = vsel %vm910_vm9, %v3497_v13, -inf }
 0x764   : > { %1304 = vmax.xlane.f32.xlu2 %v1303_v14 }
 0x767   : > { %995 = vadd.xlane.f32.xlu1 %v994_v18 }
 0x769   : > { %v1435_v23 = vpop.f32.mrf.mxu1 }
 0x76a   : > { %v3505_v24 = vsel %vm3333_vm8, %v1435_v23, -1e+30 }
 0x76b   : > { %v1442_v25 = vsel %vm910_vm9, %v3505_v24, -inf }
 0x76c   : > { %1443 = vmax.xlane.f32.xlu2 %v1442_v25 }
 0x76f   : > { %1137 = vadd.xlane.f32.xlu1 %v1136_v26 }
 0x770   : > { %1319 = vrot.lane.b32.xlu0 %v3426_v15, %s3029_s25 }
 0x771   : > { %v1437_v30 = vpop.f32.mrf.mxu1 }
 0x772   : > { %v3516_v32 = vsel %vm3341_vm10, %v1437_v30, -1e+30 }
 0x773   : > { %v1445_v34 = vsel %vm910_vm9, %v3516_v32, -inf }
 0x784   : > { %1461 = vrot.lane.b32.xlu2 %v3426_v15, %s3031_s3 }
 0x787   : > { %v1231_v19 = vpop.xlane.xlu2 %1230 }
 0x788   : > { %v1235_v36 = vsub.f32 %v1227_v57, %v1231_v19  ;;  %v1139_v57 = vsel %vm910_vm9, %v3458_v46, 0.0 }
 0x78a   : > { %v1237_v39 = vmul.f32 1.442695, %v1235_v36 }
 0x78f   : > { %v1373_v27 = vpop.xlane.xlu2 %1372  ;;  %v1234_v31 = vpop.xlane.xlu1 %1233 }
 0x790   : > { %v1377_v28 = vsub.f32 %v1369_v20, %v1373_v27  ;;  %v1236_v33 = vsub.f32 %v1228_v61, %v1234_v31 }
 0x792   : > { %v1379_v29 = vmul.f32 1.442695, %v1377_v28  ;;  %v1239_v37 = vmul.f32 1.442695, %v1236_v33 }
 0x794   : > { %2598 = vpow2.f32 %v1379_v29 }
 0x795   : > { %2600 = vpow2.f32 %v1239_v37 }
 0x796   : > { %2602 = vpow2.f32 %v1237_v39 }
 0x797   : > { %v1376_v1 = vpop.xlane.xlu2 %1375 }
 0x798   : > { %v1378_v35 = vsub.f32 %v1370_v4, %v1376_v1 }
 0x79a   : > { %v2599_v0 = vpop.eup %2598  ;;  %1446 = vmax.xlane.f32.xlu0 %v1445_v34  ;;  %v1381_v42 = vmul.f32 1.442695, %v1378_v35 }
 0x79b   : > { %v1383_v15 = vsel %vm910_vm9, %v2599_v0, 0.0  ;;  %v2601_v41 = vpop.eup %2600 }
 0x79c   : > { %1384 = vadd.xlane.f32.xlu1 %v1383_v15  ;;  %v2603_v47 = vpop.eup %2602  ;;  %2604 = vpow2.f32 %v1381_v42  ;;  %v1244_v25 = vsel %vm910_vm9, %v2601_v41, 0.0 }
 0x79d   : > { %v1247_v48 = vpack.c.bf16 %v2601_v41, %v2603_v47  ;;  %v1241_v20 = vsel %vm910_vm9, %v2603_v47, 0.0 }
 0x7a2   : > { %1066 = vadd.xlane.f32.xlu0 %v1065_v40  ;;  %v2605_v56 = vpop.eup %2604 }
 0x7a3   : > { %v1386_v58 = vsel %vm910_vm9, %v2605_v56, 0.0  ;;  %v1389_v59 = vpack.c.bf16 %v2605_v56, %v2599_v0 }
 0x7a7   : > { %v1249_v43 = vpop.permute.xlu1 %1248 }
 0x7a8   : > { %1261 = vmatpush.bf16.msra.mxu2 %v1249_v43 }
 0x7aa   : > { %1069 = vadd.xlane.f32.xlu0 %v1068_v49 }
 0x7ab   : > { %2308 = vmatmul.msk.bf16.vlgmr.msra.gmra.mxu2 %vm910_vm9, %v1247_v48 }
 0x7ad   : > { %998 = vadd.xlane.f32.xlu2 %v997_v50 }
 0x7af   : > { %v1391_v9 = vpop.permute.xlu1 %1390 }
 0x7b0   : > { %1403 = vmatpush.bf16.msrb.mxu2 %v1391_v9 }
 0x7b2   : > { %1140 = vadd.xlane.f32.xlu0 %v1139_v57 }
 0x7b5   : > { %1387 = vadd.xlane.f32.xlu2 %v1386_v58 }
 0x7ba   : > { %927 = vadd.xlane.f32.xlu0 %v926_v7 }
 0x7bb   : > { %2312 = vmatmul.msk.bf16.vlgmr.msrb.gmra.mxu2 %vm910_vm9, %v1389_v59 }
 0x7bd   : > { %924 = vadd.xlane.f32.xlu2 %v923_v22 }
 0x7c5   : > { %1242 = vadd.xlane.f32.xlu2 %v1241_v20 }
 0x7cf   : > { %v1302_v60 = vpop.xlane.xlu0 %1301 }
 0x7d0   : > { %v1306_v46 = vsub.f32 %v3491_v5, %v1302_v60 }
 0x7d2   : > { %v1308_v61 = vmul.f32 1.442695, %v1306_v46 }
 0x7d4   : > { %2606 = vpow2.f32 %v1308_v61 }
 0x7d7   : > { %v1305_v62 = vpop.xlane.xlu2 %1304 }
 0x7d8   : > { %v1307_v63 = vsub.f32 %v3497_v13, %v1305_v62 }
 0x7da   : > { %v2607_v2 = vpop.eup %2606  ;;  %v1310_v45 = vmul.f32 1.442695, %v1307_v63  ;;  %v996_v27 = vpop.xlane.xlu1 %995 }
 0x7db   : > { %v1312_v4 = vsel %vm910_vm9, %v2607_v2, 0.0 }
 0x7dc   : > { %2608 = vpow2.f32 %v1310_v45  ;;  %1313 = vadd.xlane.f32.xlu1 %v1312_v4 }
 0x7df   : > { %v1444_v52 = vpop.xlane.xlu2 %1443 }
 0x7e0   : > { %v1448_v44 = vsub.f32 %v3505_v24, %v1444_v52 }
 0x7e2   : > { %v2609_v11 = vpop.eup %2608  ;;  %v1450_v10 = vmul.f32 1.442695, %v1448_v44  ;;  %v1320_v12 = vpop.permute.xlu0 %1319 }
 0x7e3   : > { %v1318_v14 = vpack.c.bf16 %v2609_v11, %v2607_v2  ;;  %1332 = vmatpush.bf16.msrb.mxu3 %v1320_v12  ;;  %v1315_v5 = vsel %vm910_vm9, %v2609_v11, 0.0  ;;  %v1138_v33 = vpop.xlane.xlu1 %1137 }
 0x7e4   : > { %2610 = vpow2.f32 %v1450_v10  ;;  %1316 = vadd.xlane.f32.xlu0 %v1315_v5 }
 0x7e6   : > { %2310 = vmatmul.msk.bf16.vlgmr.msrb.gmra.mxu3 %vm910_vm9, %v1318_v14 }
 0x7e7   : > { %v1462_v13 = vpop.permute.xlu2 %1461 }
 0x7e8   : > { %1474 = vmatpush.bf16.msra.mxu3 %v1462_v13 }
 0x7ea   : > { %v2611_v18 = vpop.eup %2610 }
 0x7eb   : > { %v1454_v23 = vsel %vm910_vm9, %v2611_v18, 0.0 }
 0x7ec   : > { %1455 = vadd.xlane.f32.xlu0 %v1454_v23 }
 0x7f4   : > { %1245 = vadd.xlane.f32.xlu0 %v1244_v25 }
 0x80d   : > { %v1447_v24 = vpop.xlane.xlu0 %1446 }
 0x80e   : > { %v1449_v26 = vsub.f32 %v3516_v32, %v1447_v24 }
 0x80f   : > { %v1385_v61 = vpop.xlane.xlu1 %1384 }
 0x810   : > { %v1452_v19 = vmul.f32 1.442695, %v1449_v26 }
 0x812   : > { %2612 = vpow2.f32 %v1452_v19 }
 0x815   : > { %v1067_v28 = vpop.xlane.xlu0 %1066 }
 0x816   : > { %2614 = vrcp.f32 %v1067_v28 }
 0x817   : > { %2616 = vrcp.f32 %v996_v27 }
 0x818   : > { %v2613_v29 = vpop.eup %2612 }
 0x819   : > { %v1460_v30 = vpack.c.bf16 %v2613_v29, %v2611_v18  ;;  %v1457_v31 = vsel %vm910_vm9, %v2613_v29, 0.0 }
 0x81a   : > { %1458 = vadd.xlane.f32.xlu1 %v1457_v31 }
 0x81b   : > { %2314 = vmatmul.msk.bf16.vlgmr.msra.gmra.mxu3 %vm910_vm9, %v1460_v30 }
 0x81c   : > { %v2615_v0 = vpop.eup %2614 }
 0x81d   : > { %v1070_v34 = vpop.xlane.xlu0 %1069  ;;  %v1094_v32 = vmul.f32 %v2615_v0, %v3465_v51  ;;  %v2617_v15 = vpop.eup %2616 }
 0x81e   : > { %2618 = vrcp.f32 %v1070_v34  ;;  %v1023_v43 = vmul.f32 %v2617_v15, %v3440_v16 }
 0x81f   : > { %2620 = vrcp.f32 %v1138_v33  ;;  %v1096_v40 = vpack.c.bf16 %v1094_v32, %v1094_v32 }
 0x820   : > { %v999_v36 = vpop.xlane.xlu2 %998  ;;  %v1025_v56 = vpack.c.bf16 %v1023_v43, %v1023_v43 }
 0x821   : > { %2622 = vrcp.f32 %v999_v36  ;;  %v1183_v48 = vunpack.c.l.b16 %v1096_v40 }
 0x822   : > { %v1176_v22 = vunpack.c.l.b16 %v1025_v56 }
 0x824   : > { %v2619_v37 = vpop.eup %2618 }
 0x825   : > { %v1141_v39 = vpop.xlane.xlu0 %1140  ;;  %v1095_v1 = vmul.f32 %v2619_v37, %v3467_v53  ;;  %v2621_v35 = vpop.eup %2620 }
 0x826   : > { %2624 = vrcp.f32 %v1141_v39  ;;  %v1165_v50 = vmul.f32 %v2621_v35, %v3485_v6 }
 0x827   : > { %v2623_v41 = vpop.eup %2622  ;;  %v1097_v42 = vpack.c.bf16 %v1095_v1, %v1095_v1  ;;  %2626 = vrcp.f32 %v1385_v61 }
 0x828   : > { %v1024_v47 = vmul.f32 %v2623_v41, %v3442_v17  ;;  %v1167_v59 = vpack.c.bf16 %v1165_v50, %v1165_v50  ;;  %v1388_v62 = vpop.xlane.xlu2 %1387 }
 0x829   : > { %v1184_v49 = vunpack.c.l.b16 %v1097_v42  ;;  %2628 = vrcp.f32 %v1388_v62 }
 0x82a   : > { %v1026_v9 = vpack.c.bf16 %v1024_v47, %v1024_v47  ;;  %v1190_v17 = vunpack.c.l.b16 %v1167_v59  ;;  %v2417_v47 = vld [vmem:[%s3266_s24 + $0x8] sm:$0xff] }
 0x82b   : > { %v1185_v51 = vpack.c.b16 %v1184_v49, %v1183_v48  ;;  %1547 = vmatpush.bf16.msra.mxu0 %v2417_v47  ;;  %v2416_v48 = vld [vmem:[%s3266_s24] sm:$0xff]  ;;  %v2425_v47 = vld [vmem:[%s3272_s19 + $0x38] sm:$0xff] }
 0x82c   : > { %v2625_v57 = vpop.eup %2624  ;;  %v1177_v53 = vunpack.c.l.b16 %v1026_v9  ;;  %1730 = vmatpush.bf16.msra.mxu2 %v2425_v47 }
 0x82d   : > { %1186 = vrot.lane.b32.xlu2 %v1185_v51, %s3032_s8  ;;  %v1166_v58 = vmul.f32 %v2625_v57, %v3487_v8  ;;  %v2627_v8 = vpop.eup %2626  ;;  %v928_v5 = vpop.xlane.xlu0 %927 }
 0x82e   : > { %v1263_v7 = vpop.f32.mrf.mxu2  ;;  %v1178_v20 = vpack.c.b16 %v1177_v53, %v1176_v22 }
 0x82f   : > { %v1168_v16 = vpack.c.bf16 %v1166_v58, %v1166_v58  ;;  %v2629_v45 = vpop.eup %2628  ;;  %1548 = vmatpush.bf16.msra.mxu0 %v2416_v48 }
 0x830   : > { %v925_v13 = vpop.xlane.xlu2 %924 }
 0x831   : > { %v1191_v60 = vunpack.c.l.b16 %v1168_v16 }
 0x833   : > { %1179 = vrot.lane.b32.xlu1 %v1178_v20, %s3033_s14  ;;  %v1192_v6 = vpack.c.b16 %v1191_v60, %v1190_v17 }
 0x835   : > { %1193 = vrot.lane.b32.xlu0 %v1192_v6, %s3034_s17 }
 0x836   : > { %v1265_v46 = vpop.f32.mrf.mxu2 }
 0x838   : > { %v1243_v23 = vpop.xlane.xlu2 %1242 }
 0x839   : > { %2630 = vrcp.f32 %v1243_v23 }
 0x83e   : > { %v1405_v63 = vpop.f32.mrf.mxu2 }
 0x83f   : > { %v1412_v2 = vmul.f32 %v2627_v8, %v1405_v63  ;;  %v2631_v19 = vpop.eup %2630 }
 0x840   : > { %v1270_v28 = vmul.f32 %v2631_v19, %v1263_v7 }
 0x841   : > { %v1414_v52 = vpack.c.bf16 %v1412_v2, %v1412_v2 }
 0x842   : > { %v1272_v33 = vpack.c.bf16 %v1270_v28, %v1270_v28 }
 0x843   : > { %v1501_v10 = vunpack.c.l.b16 %v1414_v52 }
 0x844   : > { %v1489_v39 = vunpack.c.l.b16 %v1272_v33 }
 0x846   : > { %v1407_v4 = vpop.f32.mrf.mxu2 }
 0x847   : > { %v1413_v44 = vmul.f32 %v2629_v45, %v1407_v4 }
 0x849   : > { %v1415_v11 = vpack.c.bf16 %v1413_v44, %v1413_v44 }
 0x84b   : > { %v1502_v12 = vunpack.c.l.b16 %v1415_v11 }
 0x84d   : > { %v1503_v14 = vpack.c.b16 %v1502_v12, %v1501_v10 }
 0x84f   : > { %1504 = vrot.lane.b32.xlu0 %v1503_v14, %s3032_s8  ;;  %v1314_v24 = vpop.xlane.xlu1 %1313 }
 0x850   : > { %2632 = vrcp.f32 %v1314_v24 }
 0x856   : > { %v2633_v29 = vpop.eup %2632 }
 0x857   : > { %v1317_v18 = vpop.xlane.xlu0 %1316 }
 0x85f   : > { %v1456_v25 = vpop.xlane.xlu0 %1455 }
 0x867   : > { %v1246_v26 = vpop.xlane.xlu0 %1245 }
 0x868   : > { %2634 = vrcp.f32 %v1246_v26 }
 0x869   : > { %v1334_v27 = vpop.f32.mrf.mxu3  ;;  %2636 = vrcp.f32 %v1317_v18 }
 0x86a   : > { %v1341_v31 = vmul.f32 %v2633_v29, %v1334_v27  ;;  %2638 = vrcp.f32 %v925_v13  ;;  %v3573_v13 = vld [vmem:[%s3258_s18] sm:$0xff]  ;;  %v2664_v27 = vld [vmem:[#allocation2] sm:$0xff] }
 0x86b   : > { %2640 = vrcp.f32 %v928_v5  ;;  %v1564_v18 = vperm.slane %v3573_v13, 3 }
 0x86c   : > { %v1343_v15 = vpack.c.bf16 %v1341_v31, %v1341_v31  ;;  %2642 = vrcp.f32 %v1456_v25  ;;  %v2663_v25 = vld [vmem:[#allocation2 + $0x10] sm:$0xff] }
 0x86e   : > { %v2635_v30 = vpop.eup %2634  ;;  %v1494_v41 = vunpack.c.l.b16 %v1343_v15 }
 0x86f   : > { %v1271_v34 = vmul.f32 %v2635_v30, %v1265_v46  ;;  %v2637_v0 = vpop.eup %2636 }
 0x870   : > { %v2639_v49 = vpop.eup %2638 }
 0x871   : > { %v1273_v36 = vpack.c.bf16 %v1271_v34, %v1271_v34  ;;  %v1336_v32 = vpop.f32.mrf.mxu3  ;;  %v2641_v50 = vpop.eup %2640  ;;  %v952_v9 = vmul.f32 %v2639_v49, %v3372_v54 }
 0x872   : > { %v1342_v37 = vmul.f32 %v2637_v0, %v1336_v32  ;;  %v953_v51 = vmul.f32 %v2641_v50, %v3374_v55  ;;  %v2643_v7 = vpop.eup %2642  ;;  %v2424_v50 = vld [vmem:[%s3272_s19 + $0x30] sm:$0xff] }
 0x873   : > { %v1490_v1 = vunpack.c.l.b16 %v1273_v36  ;;  %v954_v56 = vpack.c.bf16 %v952_v9, %v952_v9  ;;  %1731 = vmatpush.bf16.msra.mxu2 %v2424_v50 }
 0x874   : > { %v1344_v40 = vpack.c.bf16 %v1342_v37, %v1342_v37  ;;  %v955_v53 = vpack.c.bf16 %v953_v51, %v953_v51 }
 0x875   : > { %v1491_v35 = vpack.c.b16 %v1490_v1, %v1489_v39  ;;  %v1171_v59 = vunpack.c.l.b16 %v954_v56 }
 0x876   : > { %v1495_v42 = vunpack.c.l.b16 %v1344_v40  ;;  %v1172_v22 = vunpack.c.l.b16 %v955_v53 }
 0x878   : > { %v1496_v43 = vpack.c.b16 %v1495_v42, %v1494_v41  ;;  %v1173_v20 = vpack.c.b16 %v1172_v22, %v1171_v59  ;;  %v2422_v59 = vld [vmem:[%s3272_s19 + $0x20] sm:$0xff]  ;;  %v2421_v22 = vld [vmem:[%s3272_s19 + $0x18] sm:$0xff] }
 0x87a   : > { %1497 = vrot.lane.b32.xlu1 %v1496_v43, %s3033_s14 }
 0x887   : > { %v1187_v6 = vpop.permute.xlu2 %1186 }
 0x88d   : > { %v1459_v57 = vpop.xlane.xlu1 %1458 }
 0x88e   : > { %2644 = vrcp.f32 %v1459_v57  ;;  %v2423_v57 = vld [vmem:[%s3272_s19 + $0x28] sm:$0xff] }
 0x88f   : > { %1732 = vmatpush.bf16.msra.mxu2 %v2423_v57 }
 0x893   : > { %1733 = vmatpush.bf16.msra.mxu2 %v2422_v59 }
 0x894   : > { %v2645_v60 = vpop.eup %2644 }
 0x897   : > { %1734 = vmatpush.bf16.msra.mxu2 %v2421_v22 }
 0x89e   : > { %v1476_v58 = vpop.f32.mrf.mxu3 }
 0x89f   : > { %v1483_v16 = vmul.f32 %v2643_v7, %v1476_v58 }
 0x8a1   : > { %v1485_v55 = vpack.c.bf16 %v1483_v16, %v1483_v16  ;;  %v2420_v16 = vld [vmem:[%s3272_s19 + $0x10] sm:$0xff] }
 0x8a2   : > { %1735 = vmatpush.bf16.msra.mxu2 %v2420_v16 }
 0x8a3   : > { %v1508_v45 = vunpack.c.l.b16 %v1485_v55 }
 0x8a5   : > { %v1180_v17 = vpop.permute.xlu1 %1179 }
 0x8a6   : > { %v1197_v46 = vsel %vm887_vm7, %v1173_v20, %v1180_v17  ;;  %v1478_v54 = vpop.f32.mrf.mxu3  ;;  %v2419_v17 = vld [vmem:[%s3272_s19 + $0x8] sm:$0xff] }
 0x8a7   : > { %v1484_v61 = vmul.f32 %v2645_v60, %v1478_v54  ;;  %v1194_v62 = vpop.permute.xlu0 %1193  ;;  %v1199_v63 = vsel %vm910_vm9, %v1197_v46, %v1187_v6  ;;  %1736 = vmatpush.bf16.msra.mxu2 %v2419_v17  ;;  %v2418_v6 = vld [vmem:[%s3272_s19] sm:$0xff] }
 0x8a8   : > { %v1202_v8 = vsel %vm1200_vm1, %v1199_v63, %v1194_v62 }
 0x8a9   : > { %v1486_v2 = vpack.c.bf16 %v1484_v61, %v1484_v61  ;;  %2323 = vmatmul.msk.bf16.vlgmr.msra.gmra.mxu0 %vm1536_vm2, %v1202_v8 }
 0x8ab   : > { %v1509_v4 = vunpack.c.l.b16 %v1486_v2  ;;  %1737 = vmatpush.bf16.msra.mxu2 %v2418_v6  ;;  %v2431_v6 = vld [vmem:[%s3274_s30 + $0x28] sm:$0xff] }
 0x8ad   : > { %v1510_v52 = vpack.c.b16 %v1509_v4, %v1508_v45 }
 0x8af   : > { %1511 = vrot.lane.b32.xlu2 %v1510_v52, %s3034_s17 }
 0x8c1   : > { %v1505_v10 = vpop.permute.xlu0 %1504 }
 0x8ec   : > { %v1498_v44 = vpop.permute.xlu1 %1497 }
 0x8ed   : > { %v1515_v11 = vsel %vm887_vm7, %v1491_v35, %v1498_v44 }
 0x8ee   : > { %v1517_v14 = vsel %vm910_vm9, %v1515_v11, %v1505_v10 }
 0x909   : > { %v1512_v12 = vpop.permute.xlu2 %1511 }
 0x90a   : > { %v1519_v5 = vsel %vm1200_vm1, %v1517_v14, %v1512_v12 }
 0x90b   : > { %2324 = vmatmul.msk.bf16.gmra.mxu0 %vm1536_vm2, %v1519_v5 }
 0x926   : > { %v1550_v23 = vpop.f32.mrf.mxu0 }
 0x927   : > { %v1560_v24 = vadd.f32 %v2663_v25, %v1550_v23 }
 0x929   : > { %v3576_v26 = vadd.f32 %v1564_v18, %v1560_v24 }
 0x92b   : > { %1569 = vadd.xlane.f32.xlu1 %v3576_v26 }
 0x92e   : > { %v1552_v19 = vpop.f32.mrf.mxu0 }
 0x92f   : > { %v1561_v28 = vadd.f32 %v2664_v27, %v1552_v19  ;;  %v1658_v27 = vperm.slane %v3573_v13, 5 }
 0x931   : > { %v3579_v29 = vadd.f32 %v1564_v18, %v1561_v28 }
 0x933   : > { %1571 = vadd.xlane.f32.xlu0 %v3579_v29 }
 0x988   : > { %v1555_v30 = vpop.f32.mrf.mxu0 }
 0x989   : > { %v1562_v31 = vadd.f32 %v1555_v30, %v3350_v38 }
 0x98b   : > { %v3583_v33 = vadd.f32 %v1564_v18, %v1562_v31 }
 0x98d   : > { %1573 = vadd.xlane.f32.xlu2 %v3583_v33 }
 0x990   : > { %v1557_v34 = vpop.f32.mrf.mxu0 }
 0x991   : > { %v1563_v0 = vadd.f32 %v1557_v34, %v3318_v21 }
 0x993   : > { %v3587_v36 = vadd.f32 %v1564_v18, %v1563_v0  ;;  %v1653_v18 = vperm.slane %v3573_v13, 4 }
 0x995   : > { %1575 = vadd.xlane.f32.xlu1 %v3587_v36 }
 0x99e   : > { %v1570_v32 = vpop.xlane.xlu1 %1569 }
 0x99f   : > { %v1577_v15 = vmul.f32 0.03125, %v1570_v32 }
 0x9a1   : > { %v1581_v37 = vsub.f32 %v3576_v26, %v1577_v15 }
 0x9a3   : > { %v1585_v39 = vmul.f32 %v3284_v3, %v1581_v37 }
 0x9a5   : > { %v1589_v38 = vmul.f32 %v1585_v39, %v1585_v39 }
 0x9a6   : > { %v1572_v1 = vpop.xlane.xlu0 %1571 }
 0x9a7   : > { %v1578_v40 = vmul.f32 0.03125, %v1572_v1  ;;  %1593 = vadd.xlane.f32.xlu2 %v1589_v38 }
 0x9a9   : > { %v1582_v35 = vsub.f32 %v3579_v29, %v1578_v40 }
 0x9ab   : > { %v1586_v21 = vmul.f32 %v3284_v3, %v1582_v35 }
 0x9ad   : > { %v1590_v41 = vmul.f32 %v1586_v21, %v1586_v21 }
 0x9af   : > { %1595 = vadd.xlane.f32.xlu0 %v1590_v41 }
 0xa00   : > { %v1574_v42 = vpop.xlane.xlu2 %1573 }
 0xa01   : > { %v1579_v43 = vmul.f32 0.03125, %v1574_v42 }
 0xa03   : > { %v1583_v48 = vsub.f32 %v3583_v33, %v1579_v43 }
 0xa05   : > { %v3597_v49 = vmul.f32 %v3284_v3, %v1583_v48 }
 0xa07   : > { %v1591_v9 = vmul.f32 %v3597_v49, %v3597_v49 }
 0xa08   : > { %v1576_v51 = vpop.xlane.xlu1 %1575 }
 0xa09   : > { %v1580_v56 = vmul.f32 0.03125, %v1576_v51  ;;  %1597 = vadd.xlane.f32.xlu1 %v1591_v9 }
 0xa0b   : > { %v1584_v53 = vsub.f32 %v3587_v36, %v1580_v56 }
 0xa0d   : > { %v3605_v58 = vmul.f32 %v3284_v3, %v1584_v53 }
 0xa0f   : > { %v1592_v7 = vmul.f32 %v3605_v58, %v3605_v58 }
 0xa11   : > { %1599 = vadd.xlane.f32.xlu2 %v1592_v7 }
 0xa1a   : > { %v1594_v20 = vpop.xlane.xlu2 %1593 }
 0xa1b   : > { %v1601_v60 = vmul.f32 0.03125, %v1594_v20 }
 0xa1d   : > { %v1605_v46 = vadd.f32 1e-05, %v1601_v60  ;;  %v2433_v60 = vld [vmem:[%s3274_s30 + $0x38] sm:$0xff] }
 0xa1e   : > { %1851 = vmatpush.bf16.msra.mxu1 %v2433_v60 }
 0xa1f   : > { %2646 = vrsqrt.f32 %v1605_v46  ;;  %vm1615_vm4 = vweird.f32 %v1605_v46 }
 0xa22   : > { %v1596_v54 = vpop.xlane.xlu0 %1595 }
 0xa23   : > { %v1602_v55 = vmul.f32 0.03125, %v1596_v54  ;;  %v2429_v54 = vld [vmem:[%s3274_s30 + $0x18] sm:$0xff] }
 0xa25   : > { %v2647_v61 = vpop.eup %2646  ;;  %v1606_v62 = vadd.f32 1e-05, %v1602_v55  ;;  %v2427_v55 = vld [vmem:[%s3274_s30 + $0x8] sm:$0xff] }
 0xa26   : > { %v1610_v63 = vmul.f32 %v2647_v61, %v1605_v46  ;;  %vm1616_vm3 = vweird.f32 %v2647_v61  ;;  %v2430_v46 = vld [vmem:[%s3274_s30 + $0x20] sm:$0xff] }
 0xa27   : > { %2648 = vrsqrt.f32 %v1606_v62  ;;  %vm1617_vm5 = vmor %vm1615_vm4, %vm1616_vm3  ;;  %vm1625_vm7 = vweird.f32 %v1606_v62 }
 0xa28   : > { %v1611_v8 = vmul.f32 %v2647_v61, %v1610_v63 }
 0xa2a   : > { %v1612_v2 = vmul.f32 0.5, %v1611_v8 }
 0xa2c   : > { %v1613_v45 = vsub.f32 1.5, %v1612_v2 }
 0xa2d   : > { %v2649_v4 = vpop.eup %2648 }
 0xa2e   : > { %v1614_v52 = vmul.f32 %v2647_v61, %v1613_v45  ;;  %v1620_v44 = vmul.f32 %v2649_v4, %v1606_v62  ;;  %vm1626_vm6 = vweird.f32 %v2649_v4  ;;  %v2426_v62 = vld [vmem:[%s3274_s30] sm:$0xff] }
 0xa2f   : > { %vm1627_vm8 = vmor %vm1625_vm7, %vm1626_vm6 }
 0xa30   : > { %v1621_v11 = vmul.f32 %v2649_v4, %v1620_v44  ;;  %v1618_v10 = vsel %vm1617_vm5, %v2647_v61, %v1614_v52  ;;  %v1681_v61 = vperm.slane %v3573_v13, 6 }
 0xa31   : > { %v1649_v5 = vmul.f32 %v1618_v10, %v1585_v39 }
 0xa32   : > { %v1622_v12 = vmul.f32 0.5, %v1621_v11 }
 0xa33   : > { %v1654_v19 = vmul.f32 %v1653_v18, %v1649_v5 }
 0xa34   : > { %v1623_v14 = vsub.f32 1.5, %v1622_v12 }
 0xa35   : > { %v1659_v30 = vadd.f32 %v1658_v27, %v1654_v19 }
 0xa36   : > { %v1624_v23 = vmul.f32 %v2649_v4, %v1623_v14 }
 0xa38   : > { %v1628_v25 = vsel %vm1627_vm8, %v2649_v4, %v1624_v23 }
 0xa39   : > { %v1650_v24 = vmul.f32 %v1628_v25, %v1586_v21 }
 0xa3b   : > { %v1655_v28 = vmul.f32 %v1653_v18, %v1650_v24 }
 0xa3d   : > { %v1660_v31 = vadd.f32 %v1658_v27, %v1655_v28 }
 0xa3f   : > { %v1663_v34 = vpack.c.bf16 %v1660_v31, %v1659_v30 }
 0xa41   : > { %1738 = vmatmul.bf16.vlgmr.msra.gmra.mxu2 %v1663_v34 }
 0xa7c   : > { %v1598_v0 = vpop.xlane.xlu1 %1597 }
 0xa7d   : > { %v1603_v32 = vmul.f32 0.03125, %v1598_v0 }
 0xa7f   : > { %v1607_v15 = vadd.f32 1e-05, %v1603_v32 }
 0xa81   : > { %2650 = vrsqrt.f32 %v1607_v15  ;;  %vm1635_vm10 = vweird.f32 %v1607_v15 }
 0xa84   : > { %v1600_v37 = vpop.xlane.xlu2 %1599 }
 0xa85   : > { %v1604_v39 = vmul.f32 0.03125, %v1600_v37 }
 0xa87   : > { %v2651_v38 = vpop.eup %2650  ;;  %v1608_v1 = vadd.f32 1e-05, %v1604_v39 }
 0xa88   : > { %v1630_v40 = vmul.f32 %v2651_v38, %v1607_v15  ;;  %vm1636_vm9 = vweird.f32 %v2651_v38 }
 0xa89   : > { %2652 = vrsqrt.f32 %v1608_v1  ;;  %vm1637_vm11 = vmor %vm1635_vm10, %vm1636_vm9  ;;  %vm1645_vm13 = vweird.f32 %v1608_v1 }
 0xa8a   : > { %v1631_v35 = vmul.f32 %v2651_v38, %v1630_v40 }
 0xa8c   : > { %v1632_v21 = vmul.f32 0.5, %v1631_v35 }
 0xa8e   : > { %v1633_v41 = vsub.f32 1.5, %v1632_v21 }
 0xa8f   : > { %v2653_v42 = vpop.eup %2652 }
 0xa90   : > { %v1634_v43 = vmul.f32 %v2651_v38, %v1633_v41  ;;  %v1640_v47 = vmul.f32 %v2653_v42, %v1608_v1  ;;  %vm1646_vm12 = vweird.f32 %v2653_v42 }
 0xa91   : > { %vm1647_vm14 = vmor %vm1645_vm13, %vm1646_vm12 }
 0xa92   : > { %v1641_v48 = vmul.f32 %v2653_v42, %v1640_v47  ;;  %v1638_v50 = vsel %vm1637_vm11, %v2651_v38, %v1634_v43 }
 0xa93   : > { %v1651_v56 = vmul.f32 %v1638_v50, %v3597_v49  ;;  %v2432_v49 = vld [vmem:[%s3274_s30 + $0x30] sm:$0xff] }
 0xa94   : > { %v1642_v9 = vmul.f32 0.5, %v1641_v48  ;;  %1852 = vmatpush.bf16.msra.mxu1 %v2432_v49 }
 0xa95   : > { %v1656_v7 = vmul.f32 %v1653_v18, %v1651_v56 }
 0xa96   : > { %v1643_v51 = vsub.f32 1.5, %v1642_v9 }
 0xa97   : > { %v1661_v16 = vadd.f32 %v1658_v27, %v1656_v7 }
 0xa98   : > { %v1644_v57 = vmul.f32 %v2653_v42, %v1643_v51  ;;  %1853 = vmatpush.bf16.msra.mxu1 %v2431_v6 }
 0xa9a   : > { %v1648_v53 = vsel %vm1647_vm14, %v2653_v42, %v1644_v57 }
 0xa9b   : > { %v1652_v59 = vmul.f32 %v1648_v53, %v3605_v58  ;;  %v2428_v58 = vld [vmem:[%s3274_s30 + $0x10] sm:$0xff] }
 0xa9c   : > { %1854 = vmatpush.bf16.msra.mxu1 %v2430_v46 }
 0xa9d   : > { %v1657_v22 = vmul.f32 %v1653_v18, %v1652_v59 }
 0xa9f   : > { %v1662_v20 = vadd.f32 %v1658_v27, %v1657_v22 }
 0xaa0   : > { %1855 = vmatpush.bf16.msra.mxu1 %v2429_v54 }
 0xaa1   : > { %v1664_v17 = vpack.c.bf16 %v1662_v20, %v1661_v16  ;;  %v1874_v16 = vperm.slane %v3573_v13, 7 }
 0xaa3   : > { %1743 = vmatmul.bf16.gmra.mxu2 %v1664_v17 }
 0xaa4   : > { %1856 = vmatpush.bf16.msra.mxu1 %v2428_v58 }
 0xaa8   : > { %1857 = vmatpush.bf16.msra.mxu1 %v2427_v55 }
 0xaac   : > { %1858 = vmatpush.bf16.msra.mxu1 %v2426_v62 }
 0xac4   : > { %v1739_v63 = vpop.f32.mrf.mxu2 }
 0xac5   : > { %v1740_v8 = vadd.f32 %v1739_v63, %v1681_v61 }
 0xac7   : > { %v1753_v2 = vmul.f32 0.044715, %v1740_v8  ;;  %v1749_v27 = vmul.f32 0.5, %v1740_v8 }
 0xac9   : > { %v1757_v45 = vmul.f32 %v1753_v2, %v1740_v8 }
 0xacb   : > { %v1761_v4 = vmul.f32 %v1757_v45, %v1740_v8 }
 0xacc   : > { %v1741_v52 = vpop.f32.mrf.mxu2 }
 0xacd   : > { %v1765_v44 = vadd.f32 %v1761_v4, %v1740_v8  ;;  %v1742_v11 = vadd.f32 %v1741_v52, %v1681_v61 }
 0xacf   : > { %v1754_v10 = vmul.f32 0.044715, %v1742_v11  ;;  %v1769_v12 = vmul.f32 0.7978846, %v1765_v44  ;;  %v1750_v28 = vmul.f32 0.5, %v1742_v11 }
 0xad1   : > { %v1758_v14 = vmul.f32 %v1754_v10, %v1742_v11  ;;  %2654 = vtanh.f32 %v1769_v12 }
 0xad3   : > { %v1762_v5 = vmul.f32 %v1758_v14, %v1742_v11 }
 0xad5   : > { %v1766_v18 = vadd.f32 %v1762_v5, %v1742_v11 }
 0xad7   : > { %v1770_v23 = vmul.f32 0.7978846, %v1766_v18  ;;  %v2655_v25 = vpop.eup %2654 }
 0xad8   : > { %v1777_v24 = vadd.f32 1.0, %v2655_v25 }
 0xad9   : > { %2656 = vtanh.f32 %v1770_v23 }
 0xada   : > { %v1781_v31 = vmul.f32 %v1777_v24, %v1749_v27 }
 0xadf   : > { %v2657_v19 = vpop.eup %2656 }
 0xae0   : > { %v1778_v30 = vadd.f32 1.0, %v2657_v19 }
 0xae2   : > { %v1782_v34 = vmul.f32 %v1778_v30, %v1750_v28 }
 0xae4   : > { %v1785_v0 = vpack.c.bf16 %v1782_v34, %v1781_v31 }
 0xae6   : > { %1859 = vmatmul.bf16.vlgmr.msra.gmra.mxu1 %v1785_v0 }
 0xb26   : > { %v1744_v32 = vpop.f32.mrf.mxu2 }
 0xb27   : > { %v1745_v15 = vadd.f32 %v1744_v32, %v1681_v61 }
 0xb29   : > { %v1755_v37 = vmul.f32 0.044715, %v1745_v15  ;;  %v1751_v56 = vmul.f32 0.5, %v1745_v15 }
 0xb2b   : > { %v1759_v39 = vmul.f32 %v1755_v37, %v1745_v15 }
 0xb2d   : > { %v1763_v38 = vmul.f32 %v1759_v39, %v1745_v15 }
 0xb2e   : > { %v1746_v1 = vpop.f32.mrf.mxu2 }
 0xb2f   : > { %v1747_v40 = vadd.f32 %v1746_v1, %v1681_v61  ;;  %v1767_v35 = vadd.f32 %v1763_v38, %v1745_v15 }
 0xb31   : > { %v1756_v21 = vmul.f32 0.044715, %v1747_v40  ;;  %v1771_v42 = vmul.f32 0.7978846, %v1767_v35  ;;  %v1752_v57 = vmul.f32 0.5, %v1747_v40 }
 0xb33   : > { %v1760_v41 = vmul.f32 %v1756_v21, %v1747_v40  ;;  %2658 = vtanh.f32 %v1771_v42 }
 0xb35   : > { %v1764_v43 = vmul.f32 %v1760_v41, %v1747_v40 }
 0xb37   : > { %v1768_v47 = vadd.f32 %v1764_v43, %v1747_v40 }
 0xb39   : > { %v1772_v48 = vmul.f32 0.7978846, %v1768_v47  ;;  %v2659_v50 = vpop.eup %2658 }
 0xb3a   : > { %v1779_v9 = vadd.f32 1.0, %v2659_v50 }
 0xb3b   : > { %2660 = vtanh.f32 %v1772_v48 }
 0xb3c   : > { %v1783_v59 = vmul.f32 %v1779_v9, %v1751_v56 }
 0xb41   : > { %v2661_v51 = vpop.eup %2660 }
 0xb42   : > { %v1780_v53 = vadd.f32 1.0, %v2661_v51 }
 0xb44   : > { %v1784_v7 = vmul.f32 %v1780_v53, %v1752_v57 }
 0xb46   : > { %v1786_v22 = vpack.c.bf16 %v1784_v7, %v1783_v59 }
 0xb48   : > { %1864 = vmatmul.bf16.gmra.mxu1 %v1786_v22 }
 0xb63   : > { %v1860_v20 = vpop.f32.mrf.mxu1 }
 0xb64   : > { %v1870_v17 = vadd.f32 %v1860_v20, %v3576_v26 }
 0xb66   : > { %v1875_v60 = vadd.f32 %v1874_v16, %v1870_v17 }
 0xb68   : > { %1879 = vst [vmem:[#allocation2 + $0x10] sm:$0xff] %v1875_v60 }
 0xb6b   : > { %v1862_v49 = vpop.f32.mrf.mxu1 }
 0xb6c   : > { %v1871_v6 = vadd.f32 %v1862_v49, %v3579_v29 }
 0xb6e   : > { %v1876_v46 = vadd.f32 %v1874_v16, %v1871_v6 }
 0xb70   : > { %1880 = vst [vmem:[#allocation2] sm:$0xff] %v1876_v46 }
 0xbc5   : > { %v1865_v54 = vpop.f32.mrf.mxu1 }
 0xbc6   : > { %v1872_v58 = vadd.f32 %v1865_v54, %v3583_v33 }
 0xbc8   : > { %v1877_v55 = vadd.f32 %v1874_v16, %v1872_v58 }
 0xbca   : > { %1881 = vst [vmem:[#allocation2 + $0x18] sm:$0xff] %v1877_v55 }
 0xbcd   : > { %v1867_v61 = vpop.f32.mrf.mxu1 }
 0xbce   : > { %v1873_v62 = vadd.f32 %v1867_v61, %v3587_v36  ;;  %1886 = sbr.rel (%p2389_p2) target bundleno = 3442 (0xd72), region = 96 }
 0xbd0   : > { %v1878_v63 = vadd.f32 %v1874_v16, %v1873_v62 }
 0xbd2   : > { %1882 = vst [vmem:[#allocation2 + $0x8] sm:$0xff] %v1878_v63 }
 0xbd3   : > { %1890 = vadd.xlane.f32.xlu1 %v1876_v46  ;;  %1894 = vadd.xlane.f32.xlu0 %v1878_v63  ;;  %v1887_v48 = vld [vmem:[%s3719_s29] sm:$0x7]  ;;  %vm2005_vm11 = vcmask 253952  }
 0xbd4   : > { %v1972_v59 = vperm.slane %v1887_v48, 0  ;;  %v1977_v17 = vperm.slane %v1887_v48, 1 }
 0xbdb   : > { %1888 = vadd.xlane.f32.xlu1 %v1875_v60  ;;  %1892 = vadd.xlane.f32.xlu0 %v1877_v55 }
 0xc46   : > { %v1891_v13 = vpop.xlane.xlu1 %1890  ;;  %v1895_v26 = vpop.xlane.xlu0 %1894 }
 0xc47   : > { %v1897_v29 = vmul.f32 0.03125, %v1891_v13  ;;  %v1899_v8 = vmul.f32 0.03125, %v1895_v26 }
 0xc49   : > { %v1901_v2 = vsub.f32 %v1876_v46, %v1897_v29  ;;  %v1903_v33 = vsub.f32 %v1878_v63, %v1899_v8 }
 0xc4b   : > { %v3634_v45 = vmul.f32 %v3284_v3, %v1901_v2  ;;  %v1907_v36 = vmul.f32 %v3284_v3, %v1903_v33 }
 0xc4d   : > { %v1909_v4 = vmul.f32 %v3634_v45, %v3634_v45  ;;  %v1911_v52 = vmul.f32 %v1907_v36, %v1907_v36 }
 0xc4e   : > { %v1889_v44 = vpop.xlane.xlu1 %1888  ;;  %v1893_v11 = vpop.xlane.xlu0 %1892 }
 0xc4f   : > { %v1896_v10 = vmul.f32 0.03125, %v1889_v44  ;;  %v1898_v12 = vmul.f32 0.03125, %v1893_v11  ;;  %1914 = vadd.xlane.f32.xlu0 %v1909_v4  ;;  %1918 = vadd.xlane.f32.xlu2 %v1911_v52 }
 0xc51   : > { %v1900_v14 = vsub.f32 %v1875_v60, %v1896_v10  ;;  %v1902_v5 = vsub.f32 %v1877_v55, %v1898_v12  ;;  %v1983_v10 = vrot.slane %v1887_v48, 2 }
 0xc53   : > { %v3640_v18 = vmul.f32 %v3284_v3, %v1900_v14  ;;  %v3643_v23 = vmul.f32 %v3284_v3, %v1902_v5 }
 0xc55   : > { %v1908_v25 = vmul.f32 %v3640_v18, %v3640_v18  ;;  %v1910_v24 = vmul.f32 %v3643_v23, %v3643_v23 }
 0xc57   : > { %1912 = vadd.xlane.f32.xlu1 %v1908_v25  ;;  %1916 = vadd.xlane.f32.xlu2 %v1910_v24 }
 0xcc2   : > { %v1919_v19 = vpop.xlane.xlu2 %1918  ;;  %v1915_v27 = vpop.xlane.xlu0 %1914 }
 0xcc3   : > { %v1923_v28 = vmul.f32 0.03125, %v1919_v19  ;;  %v1921_v30 = vmul.f32 0.03125, %v1915_v27 }
 0xcc5   : > { %v1927_v31 = vadd.f32 1e-05, %v1923_v28  ;;  %v1925_v34 = vadd.f32 1e-05, %v1921_v30 }
 0xcc7   : > { %2665 = vrsqrt.f32 %v1927_v31  ;;  %vm1964_vm0 = vweird.f32 %v1927_v31  ;;  %vm1944_vm2 = vweird.f32 %v1925_v34 }
 0xcc8   : > { %2667 = vrsqrt.f32 %v1925_v34 }
 0xcca   : > { %v1913_v0 = vpop.xlane.xlu1 %1912  ;;  %v1917_v32 = vpop.xlane.xlu2 %1916 }
 0xccb   : > { %v1920_v3 = vmul.f32 0.03125, %v1913_v0  ;;  %v1922_v15 = vmul.f32 0.03125, %v1917_v32 }
 0xccd   : > { %v2666_v37 = vpop.eup %2665  ;;  %v1924_v39 = vadd.f32 1e-05, %v1920_v3  ;;  %v1926_v38 = vadd.f32 1e-05, %v1922_v15 }
 0xcce   : > { %v2668_v1 = vpop.eup %2667  ;;  %v1959_v40 = vmul.f32 %v2666_v37, %v1927_v31  ;;  %vm1965_vm15 = vweird.f32 %v2666_v37 }
 0xccf   : > { %v1939_v35 = vmul.f32 %v2668_v1, %v1925_v34  ;;  %2669 = vrsqrt.f32 %v1924_v39  ;;  %vm1966_vm1 = vmor %vm1964_vm0, %vm1965_vm15  ;;  %vm1945_vm3 = vweird.f32 %v2668_v1  ;;  %vm1934_vm6 = vweird.f32 %v1924_v39 }
 0xcd0   : > { %v1960_v21 = vmul.f32 %v2666_v37, %v1959_v40  ;;  %2671 = vrsqrt.f32 %v1926_v38  ;;  %vm1946_vm5 = vmor %vm1944_vm2, %vm1945_vm3  ;;  %vm1954_vm7 = vweird.f32 %v1926_v38 }
 0xcd1   : > { %v1940_v41 = vmul.f32 %v2668_v1, %v1939_v35 }
 0xcd2   : > { %v1961_v42 = vmul.f32 0.5, %v1960_v21 }
 0xcd3   : > { %v1941_v43 = vmul.f32 0.5, %v1940_v41 }
 0xcd4   : > { %v1962_v47 = vsub.f32 1.5, %v1961_v42 }
 0xcd5   : > { %v2670_v50 = vpop.eup %2669  ;;  %v1942_v57 = vsub.f32 1.5, %v1941_v43 }
 0xcd6   : > { %v2672_v9 = vpop.eup %2671  ;;  %v1929_v51 = vmul.f32 %v2670_v50, %v1924_v39  ;;  %v1963_v56 = vmul.f32 %v2666_v37, %v1962_v47  ;;  %vm1935_vm8 = vweird.f32 %v2670_v50 }
 0xcd7   : > { %v1949_v53 = vmul.f32 %v2672_v9, %v1926_v38  ;;  %v1943_v49 = vmul.f32 %v2668_v1, %v1942_v57  ;;  %vm1955_vm4 = vweird.f32 %v2672_v9  ;;  %vm1936_vm10 = vmor %vm1934_vm6, %vm1935_vm8 }
 0xcd8   : > { %v1930_v7 = vmul.f32 %v2670_v50, %v1929_v51  ;;  %v1967_v22 = vsel %vm1966_vm1, %v2666_v37, %v1963_v56  ;;  %vm1956_vm9 = vmor %vm1954_vm7, %vm1955_vm4 }
 0xcd9   : > { %v1950_v16 = vmul.f32 %v2672_v9, %v1949_v53  ;;  %v1971_v20 = vmul.f32 %v1967_v22, %v1907_v36  ;;  %v1947_v63 = vsel %vm1946_vm5, %v2668_v1, %v1943_v49 }
 0xcda   : > { %v1931_v60 = vmul.f32 0.5, %v1930_v7  ;;  %v1969_v29 = vmul.f32 %v1947_v63, %v3634_v45 }
 0xcdb   : > { %v1951_v6 = vmul.f32 0.5, %v1950_v16  ;;  %v1976_v46 = vmul.f32 %v1972_v59, %v1971_v20 }
 0xcdc   : > { %v1932_v54 = vsub.f32 1.5, %v1931_v60  ;;  %v1974_v36 = vmul.f32 %v1972_v59, %v1969_v29 }
 0xcdd   : > { %v1952_v58 = vsub.f32 1.5, %v1951_v6  ;;  %v1981_v55 = vadd.f32 %v1977_v17, %v1976_v46 }
 0xcde   : > { %v1933_v61 = vmul.f32 %v2670_v50, %v1932_v54  ;;  %v1979_v52 = vadd.f32 %v1977_v17, %v1974_v36 }
 0xcdf   : > { %v1953_v62 = vmul.f32 %v2672_v9, %v1952_v58  ;;  %1997 = vmatpush.xpose.msra.mxu0 %v1981_v55 }
 0xce0   : > { %v1937_v8 = vsel %vm1936_vm10, %v2670_v50, %v1933_v61 }
 0xce1   : > { %v1957_v13 = vsel %vm1956_vm9, %v2672_v9, %v1953_v62  ;;  %v1968_v4 = vmul.f32 %v1937_v8, %v3640_v18 }
 0xce2   : > { %v1970_v26 = vmul.f32 %v1957_v13, %v3643_v23 }
 0xce3   : > { %v1973_v44 = vmul.f32 %v1972_v59, %v1968_v4 }
 0xce4   : > { %v1975_v2 = vmul.f32 %v1972_v59, %v1970_v26 }
 0xce5   : > { %v1978_v11 = vadd.f32 %v1977_v17, %v1973_v44 }
 0xce6   : > { %v1980_v33 = vadd.f32 %v1977_v17, %v1975_v2 }
 0xce8   : > { %1998 = vmatpush.xpose.msra.mxu0 %v1980_v33 }
 0xcec   : > { %1999 = vmatpush.xpose.msra.mxu0 %v1979_v52 }
 0xcf0   : > { %2000 = vmatpush.xpose.msra.mxu0 %v1978_v11 }
 0xcf3   : > { %2001 = vmatmul.f32.vlgmr.msra.gmra.mxu0 %v1983_v10 }
 0xd70   : > { %v2002_v12 = vpop.f32.mrf.mxu0 }
 0xd71   : > { %2006 = vst.msk [vmem:[#allocation17] sm:$0x1] %vm2005_vm11, %v2002_v12 }
 0xd72 PF: > { %p2501_p3 = scmp.eq.s32.totalorder %s3115_s15, 1  ;;  %s3720_s9 = sld [smem:[#allocation33_spill]] }
 0xd73   : > { %s3035_s19 = smov [#allocation17]  }
 0xd74   : > { %s2014_s23 = sshll.u32 %s3035_s19, 4  ;;  %s2015_s23 = int_to_ptr.vmem [resolvable:$true] %s2014_s23 }
 0xd78   : > { %s2016_s24 = sshll.u32 %s3720_s9, 4  ;;  %s2017_s24 = int_to_ptr.hbm [resolvable:$true] %s2016_s24 }
 0xd79   : > { %2465 = dma.vmem_to_hbm [thread:$0]  (%p2501_p3), %s2015_s23, 16, %s2017_s24, [#allocation5]  }
 0xd7a   : > { %2986 = dma.done.wait (%p2501_p3), [#allocation5], 16  }
 0xd7b   : > { %2988 = vsyncadd (%p2501_p3), [#allocation5], 4294967280 }
 0xd7c PF: > { %s3721_s30 = sld [smem:[#allocation25_spill]]  ;;  %s3727_s12 = smov %s3007_s13 }
 0xd7d   : > { %s3722_s16 = sld [smem:[#allocation24_spill]] }
 0xd7e   : > { %s3723_s11 = sld [smem:[#allocation27_spill]] }
 0xd7f   : > { %s3724_s15 = sld [smem:[#allocation26_spill]] }
 0xd82   : > { %s31_s14 = sadd.s32 1, %s3721_s30   ;;  %s3725_s30 = smov %s2995_s10 }
 0xd83   : > { %p28_p4 = scmp.ge.s32.totalorder %s31_s14, 4   ;;  %s3726_s10 = smov %s3722_s16 }
 0xd85   : > { %s3728_s13 = smov %s3724_s15  ;;  %30 = sbr.rel (!%p28_p4) target bundleno = 18 (0x12), region = 164 }
 0xd8a   :  { %2030 = vsyncpa [#allocation4], 1 }
 0xd8b   :  { %2032 = vsyncpa [#allocation4 + $0x1], 1 }
 0xd8c   :  { %2033 = vsyncpa [#allocation7], 1 }
 0xd8d   :  { %2034 = vsyncpa [#allocation10], 1 }
 0xd8e   :  { %2036 = vsyncpa [#allocation10 + $0x1], 1 }
 0xd8f   :  { %2037 = vsyncpa [#allocation13], 1 }
 0xd90   :  { %2039 = vsyncpa [#allocation13 + $0x1], 1 }
 0xd91   :  { %2040 = vsyncpa [#allocation16], 1 }
 0xd92   :  { %2042 = vsyncpa [#allocation16 + $0x1], 1 }
 0xd93   :  { %2043 = vsyncpa [#allocation5], 1 }
 0xd94   :  { %2045 = vsyncpa [#allocation5 + $0x1], 1 }

</bundles_post_ra>
